<compile_context>
chip_gen: v7x
topology: tpu7x:2x2x1
jax: 0.10.0
libtpu: 0.0.40
codegen_flags: <defaults>
</compile_context>

<pallas_src>
import math

import jax
import jax.numpy as jnp
import numpy as np
from jax.experimental import pallas as pl
from jax.experimental.pallas import tpu as pltpu

NUM_HEADS = 4
EPS = 1e-6
_NEG_INF = -1e9
_FF_CHUNK = 512


def _layer_norm(v, alpha, beta, d):
    # Reproduce the reference LayerNorm exactly (sum used in place of mean).
    v_sum = jnp.sum(v, axis=-1, keepdims=True)
    mu = v_sum / d
    var = jnp.sum((v - mu) ** 2, axis=-1, keepdims=True) / (d - 1)  # unbiased, like torch.std
    std = jnp.sqrt(var)
    return alpha * (v - v_sum) / (std + EPS) + beta


def encoder_layer_kernel(x_ref, bias_ref,
                         ln1a_ref, ln1b_ref,
                         wqkv_ref, bqkv_ref,
                         wo_ref, bo_ref,
                         ln2a_ref, ln2b_ref,
                         w1_ref, b1_ref, w2_ref, b2_ref,
                         out_ref):
    f32 = jnp.float32
    bf16 = jnp.bfloat16

    x = x_ref[0]                      # (S, D) f32
    bias = bias_ref[0].astype(f32)    # (S, S) additive mask bias (0 / -1e9)
    S, D = x.shape
    d_k = D // NUM_HEADS
    scale = 1.0 / math.sqrt(d_k)

    # ---------------- sublayer 0: x + self_attn(LN(x)) ----------------
    xn = _layer_norm(x, ln1a_ref[0], ln1b_ref[0], D)
    xn_b = xn.astype(bf16)

    # Fused QKV projection: one (S,D) x (D,3D) MXU pass.
    qkv = jnp.dot(xn_b, wqkv_ref[...], preferred_element_type=f32) + bqkv_ref[0]
    q_b = (qkv[:, 0:D] * scale).astype(bf16)   # fold 1/sqrt(d_k) into q (S*D elems)
    k_b = qkv[:, D:2 * D].astype(bf16)
    v_b = qkv[:, 2 * D:3 * D].astype(bf16)

    # Per-head attention accumulated straight into the output projection:
    #   concat_h(head_h) @ Wo  ==  sum_h head_h @ Wo[h*d_k:(h+1)*d_k, :]
    attn_acc = jnp.zeros((S, D), f32)
    for h in range(NUM_HEADS):
        sl = slice(h * d_k, (h + 1) * d_k)
        s = jnp.dot(q_b[:, sl], k_b[:, sl].T, preferred_element_type=f32) + bias
        s = s - jnp.max(s, axis=-1, keepdims=True)
        p = jnp.exp(s)
        denom = jnp.sum(p, axis=-1, keepdims=True)
        # Unnormalized PV first, then normalize only S*d_k elements on the EUP.
        o = jnp.dot(p.astype(bf16), v_b[:, sl], preferred_element_type=f32)
        o = o * pl.reciprocal(denom, approx=True)
        attn_acc = attn_acc + jnp.dot(o.astype(bf16), wo_ref[sl, :],
                                      preferred_element_type=f32)

    x1 = x + attn_acc + bo_ref[0]     # dropout = identity (eval mode)

    # ---------------- sublayer 1: x1 + FFN(LN(x1)) ----------------
    xn2 = _layer_norm(x1, ln2a_ref[0], ln2b_ref[0], D)
    xn2_b = xn2.astype(bf16)

    F = w1_ref.shape[1]
    fc = _FF_CHUNK if (F > _FF_CHUNK and F % _FF_CHUNK == 0) else F
    ff_acc = jnp.zeros((S, D), f32)
    for c in range(F // fc):
        csl = slice(c * fc, (c + 1) * fc)
        h1 = jnp.dot(xn2_b, w1_ref[:, csl], preferred_element_type=f32) + b1_ref[0, csl]
        h1 = jnp.maximum(h1, 0.0)
        ff_acc = ff_acc + jnp.dot(h1.astype(bf16), w2_ref[csl, :],
                                  preferred_element_type=f32)

    out_ref[0] = x1 + ff_acc + b2_ref[0]


def _estimate_vmem_limit(B, S, D, F):
    f32, bf16 = 4, 2
    fc = _FF_CHUNK if (F > _FF_CHUNK and F % _FF_CHUNK == 0) else F
    # streamed per-batch blocks (double-buffered): x, mask bias, out
    stream = 2 * (S * D * f32 + S * S * bf16 + S * D * f32)
    # replicated params (assume worst case: double-buffered)
    params = 2 * ((4 * D * D + 2 * D * F) * bf16 + (11 * D + F) * f32)
    # in-kernel temporaries (rough)
    temps = 16 * S * D * f32 + 3 * S * S * f32 + 2 * S * fc * f32
    est = 2 * (stream + params + temps)        # 2x headroom
    return int(min(max(est, 32 * 1024 * 1024), 64 * 1024 * 1024))


def _build_encoder_call(B, S, D, F, single_buffer_weights):
    def pspec(shape):
        if single_buffer_weights:
            # Replicated weights/biases do not need two pipeline buffers.
            return pl.BlockSpec(shape, lambda b: (0, 0), pipeline_mode=pl.Buffered(1))
        return pl.BlockSpec(shape, lambda b: (0, 0))

    in_specs = [
        pl.BlockSpec((1, S, D), lambda b: (b, 0, 0)),   # x
        pl.BlockSpec((1, S, S), lambda b: (b, 0, 0)),   # additive mask bias (bf16)
        pspec((1, D)), pspec((1, D)),                   # ln1 alpha, beta
        pspec((D, 3 * D)), pspec((1, 3 * D)),           # fused wqkv, bqkv
        pspec((D, D)), pspec((1, D)),                   # wo, bo
        pspec((1, D)), pspec((1, D)),                   # ln2 alpha, beta
        pspec((D, F)), pspec((1, F)),                   # w1, b1
        pspec((F, D)), pspec((1, D)),                   # w2, b2
    ]

    return pl.pallas_call(
        encoder_layer_kernel,
        out_shape=jax.ShapeDtypeStruct((B, S, D), jnp.float32),
        grid_spec=pltpu.PrefetchScalarGridSpec(
            num_scalar_prefetch=0,
            grid=(B,),
            in_specs=in_specs,
            out_specs=pl.BlockSpec((1, S, D), lambda b: (b, 0, 0)),
        ),
        compiler_params=pltpu.CompilerParams(
            dimension_semantics=("parallel",),
            vmem_limit_bytes=_estimate_vmem_limit(B, S, D, F),
        ),
    )


def encoder_layer(x, mask, params):
    B, S, D = x.shape
    F = params["w1"].shape[1]
    bf16 = jnp.bfloat16

    # Mask -> additive bias once on the host side (also halves its HBM traffic).
    bias = jnp.where(mask == 0, _NEG_INF, 0.0).astype(bf16)
    # Fuse Q/K/V weights & biases into single operands (one matmul in-kernel).
    wqkv = jnp.concatenate([params["wq"], params["wk"], params["wv"]], axis=1).astype(bf16)
    bqkv = jnp.concatenate([params["bq"], params["bk"], params["bv"]], axis=1)

    args = (
        x, bias,
        params["ln1_a"], params["ln1_b"],
        wqkv, bqkv,
        params["wo"].astype(bf16), params["bo"],
        params["ln2_a"], params["ln2_b"],
        params["w1"].astype(bf16), params["b1"],
        params["w2"].astype(bf16), params["b2"],
    )

    try:
        return _build_encoder_call(B, S, D, F, single_buffer_weights=True)(*args)
    except Exception:
        # Fallback for jax versions / lowerings without BlockSpec(pipeline_mode=Buffered(1)).
        return _build_encoder_call(B, S, D, F, single_buffer_weights=False)(*args)


def encoder_layer_ref(x, mask, params, matmul_dtype=jnp.bfloat16):
    """Pure-JAX reference with the PyTorch module's semantics, mirroring the kernel's
    matmul precision (operands cast to `matmul_dtype`, f32 accumulation)."""
    B, S, D = x.shape
    d_k = D // NUM_HEADS
    scale = 1.0 / math.sqrt(d_k)

    def mm(a, b):
        return jnp.dot(a.astype(matmul_dtype), b.astype(matmul_dtype),
                       preferred_element_type=jnp.float32)

    bias = jnp.where(mask == 0, _NEG_INF, 0.0).astype(jnp.bfloat16).astype(jnp.float32)

    def one(xb, biasb):
        xn = _layer_norm(xb, params["ln1_a"][0], params["ln1_b"][0], D)
        q = (mm(xn, params["wq"]) + params["bq"][0]) * scale
        k = mm(xn, params["wk"]) + params["bk"][0]
        v = mm(xn, params["wv"]) + params["bv"][0]
        attn = jnp.zeros((S, D), jnp.float32)
        for h in range(NUM_HEADS):
            sl = slice(h * d_k, (h + 1) * d_k)
            s = mm(q[:, sl], k[:, sl].T) + biasb
            s = s - jnp.max(s, axis=-1, keepdims=True)
            p = jnp.exp(s)
            denom = jnp.sum(p, axis=-1, keepdims=True)
            o = mm(p, v[:, sl]) / denom
            attn = attn + mm(o, params["wo"][sl, :])
        x1 = xb + attn + params["bo"][0]
        xn2 = _layer_norm(x1, params["ln2_a"][0], params["ln2_b"][0], D)
        h1 = jnp.maximum(mm(xn2, params["w1"]) + params["b1"][0], 0.0)
        ff = mm(h1, params["w2"])
        return x1 + ff + params["b2"][0]

    return jax.vmap(one)(x, bias)


def make_params(key, D, F_DIM):
    ks = jax.random.split(key, 8)
    std = 0.05
    return {
        "ln1_a": jnp.ones((1, D), jnp.float32),
        "ln1_b": jnp.zeros((1, D), jnp.float32),
        "ln2_a": jnp.ones((1, D), jnp.float32),
        "ln2_b": jnp.zeros((1, D), jnp.float32),
        "wq": std * jax.random.normal(ks[0], (D, D), jnp.float32),
        "wk": std * jax.random.normal(ks[1], (D, D), jnp.float32),
        "wv": std * jax.random.normal(ks[2], (D, D), jnp.float32),
        "wo": std * jax.random.normal(ks[3], (D, D), jnp.float32),
        "bq": std * jax.random.normal(ks[4], (1, D), jnp.float32),
        "bk": std * jax.random.normal(ks[5], (1, D), jnp.float32),
        "bv": std * jax.random.normal(ks[6], (1, D), jnp.float32),
        "bo": jnp.zeros((1, D), jnp.float32),
        "w1": std * jax.random.normal(ks[7], (D, F_DIM), jnp.float32),
        "b1": jnp.zeros((1, F_DIM), jnp.float32),
        "w2": std * jax.random.normal(jax.random.fold_in(key, 99), (F_DIM, D), jnp.float32),
        "b2": jnp.zeros((1, D), jnp.float32),
    }


if __name__ == "__main__":
    B, S, D, F_DIM = 2, 8, 32, 64

    key = jax.random.PRNGKey(0)
    kx, kp = jax.random.split(key)
    x = jax.random.normal(kx, (B, S, D), jnp.float32)
    mask = jnp.ones((B, S, S), jnp.float32)   # encoder self-attention: no masking
    params = make_params(kp, D, F_DIM)

    out = jax.block_until_ready(encoder_layer(x, mask, params))
    ref = jax.block_until_ready(encoder_layer_ref(x, mask, params))

    # Reference mirrors the kernel's bf16 matmul operands; tolerance budgets for the
    # approximate EUP reciprocal and MXU accumulation-order differences.
    np.testing.assert_allclose(np.asarray(out), np.asarray(ref), rtol=3e-2, atol=3e-2)

    print("KERNEL_OK")
</pallas_src>

<mosaic_0001>
module attributes {stable_mosaic.version = 11 : i64} {
  func.func @encoder_layer_kernel(%arg0: i32, %arg1: memref<1x8x32xf32, #tpu.memory_space<vmem>>, %arg2: memref<1x8x8xbf16, #tpu.memory_space<vmem>>, %arg3: memref<1x32xf32, #tpu.memory_space<vmem>>, %arg4: memref<1x32xf32, #tpu.memory_space<vmem>>, %arg5: memref<32x96xbf16, #tpu.memory_space<vmem>>, %arg6: memref<1x96xf32, #tpu.memory_space<vmem>>, %arg7: memref<32x32xbf16, #tpu.memory_space<vmem>>, %arg8: memref<1x32xf32, #tpu.memory_space<vmem>>, %arg9: memref<1x32xf32, #tpu.memory_space<vmem>>, %arg10: memref<1x32xf32, #tpu.memory_space<vmem>>, %arg11: memref<32x64xbf16, #tpu.memory_space<vmem>>, %arg12: memref<1x64xf32, #tpu.memory_space<vmem>>, %arg13: memref<64x32xbf16, #tpu.memory_space<vmem>>, %arg14: memref<1x32xf32, #tpu.memory_space<vmem>>, %arg15: memref<1x8x32xf32, #tpu.memory_space<vmem>>) attributes {dimension_semantics = [#tpu.dimension_semantics<parallel>], iteration_bounds = array<i64: 2>, scalar_prefetch = 0 : i64, scratch_operands = 0 : i64, tpu.core_type = #tpu.core_type<tc>, window_params = [{transform_indices = @transform_0, window_bounds = array<i64: 1, 8, 32>}, {transform_indices = @transform_1, window_bounds = array<i64: 1, 8, 8>}, {pipeline_mode = #tpu.pipeline_mode<synchronous>, transform_indices = @transform_2, window_bounds = array<i64: 1, 32>}, {pipeline_mode = #tpu.pipeline_mode<synchronous>, transform_indices = @transform_3, window_bounds = array<i64: 1, 32>}, {pipeline_mode = #tpu.pipeline_mode<synchronous>, transform_indices = @transform_4, window_bounds = array<i64: 32, 96>}, {pipeline_mode = #tpu.pipeline_mode<synchronous>, transform_indices = @transform_5, window_bounds = array<i64: 1, 96>}, {pipeline_mode = #tpu.pipeline_mode<synchronous>, transform_indices = @transform_6, window_bounds = array<i64: 32, 32>}, {pipeline_mode = #tpu.pipeline_mode<synchronous>, transform_indices = @transform_7, window_bounds = array<i64: 1, 32>}, {pipeline_mode = #tpu.pipeline_mode<synchronous>, transform_indices = @transform_8, window_bounds = array<i64: 1, 32>}, {pipeline_mode = #tpu.pipeline_mode<synchronous>, transform_indices = @transform_9, window_bounds = array<i64: 1, 32>}, {pipeline_mode = #tpu.pipeline_mode<synchronous>, transform_indices = @transform_10, window_bounds = array<i64: 32, 64>}, {pipeline_mode = #tpu.pipeline_mode<synchronous>, transform_indices = @transform_11, window_bounds = array<i64: 1, 64>}, {pipeline_mode = #tpu.pipeline_mode<synchronous>, transform_indices = @transform_12, window_bounds = array<i64: 64, 32>}, {pipeline_mode = #tpu.pipeline_mode<synchronous>, transform_indices = @transform_13, window_bounds = array<i64: 1, 32>}, {transform_indices = @transform_14, window_bounds = array<i64: 1, 8, 32>}]} {
    %c0 = arith.constant 0 : index
    %c0_0 = arith.constant 0 : index
    %c0_1 = arith.constant 0 : index
    %0 = vector.load %arg1[%c0, %c0_0, %c0_1] : memref<1x8x32xf32, #tpu.memory_space<vmem>>, vector<1x8x32xf32>
    %1 = vector.shape_cast %0 : vector<1x8x32xf32> to vector<8x32xf32>
    %c0_2 = arith.constant 0 : index
    %c0_3 = arith.constant 0 : index
    %c0_4 = arith.constant 0 : index
    %2 = vector.load %arg2[%c0_2, %c0_3, %c0_4] : memref<1x8x8xbf16, #tpu.memory_space<vmem>>, vector<1x8x8xbf16>
    %3 = vector.shape_cast %2 : vector<1x8x8xbf16> to vector<8x8xbf16>
    %4 = arith.extf %3 : vector<8x8xbf16> to vector<8x8xf32>
    %c0_5 = arith.constant 0 : index
    %c0_6 = arith.constant 0 : index
    %5 = vector.load %arg3[%c0_5, %c0_6] : memref<1x32xf32, #tpu.memory_space<vmem>>, vector<1x32xf32>
    %6 = vector.shape_cast %5 : vector<1x32xf32> to vector<32xf32>
    %c0_7 = arith.constant 0 : index
    %c0_8 = arith.constant 0 : index
    %7 = vector.load %arg4[%c0_7, %c0_8] : memref<1x32xf32, #tpu.memory_space<vmem>>, vector<1x32xf32>
    %8 = vector.shape_cast %7 : vector<1x32xf32> to vector<32xf32>
    %cst = arith.constant dense<0.000000e+00> : vector<8xf32>
    %9 = vector.multi_reduction <add>, %1, %cst [1] : vector<8x32xf32> to vector<8xf32>
    %10 = vector.shape_cast %9 : vector<8xf32> to vector<8x1xf32>
    %cst_9 = arith.constant 3.200000e+01 : f32
    %11 = vector.broadcast %cst_9 : f32 to vector<8x1xf32>
    %12 = arith.divf %10, %11 : vector<8x1xf32>
    %13 = vector.broadcast %12 : vector<8x1xf32> to vector<8x32xf32>
    %14 = arith.subf %1, %13 : vector<8x32xf32>
    %15 = arith.mulf %14, %14 : vector<8x32xf32>
    %cst_10 = arith.constant dense<0.000000e+00> : vector<8xf32>
    %16 = vector.multi_reduction <add>, %15, %cst_10 [1] : vector<8x32xf32> to vector<8xf32>
    %17 = vector.shape_cast %16 : vector<8xf32> to vector<8x1xf32>
    %cst_11 = arith.constant 3.100000e+01 : f32
    %18 = vector.broadcast %cst_11 : f32 to vector<8x1xf32>
    %19 = arith.divf %17, %18 : vector<8x1xf32>
    %20 = math.sqrt %19 : vector<8x1xf32>
    %21 = vector.broadcast %10 : vector<8x1xf32> to vector<8x32xf32>
    %22 = arith.subf %1, %21 : vector<8x32xf32>
    %23 = vector.shape_cast %6 : vector<32xf32> to vector<1x32xf32>
    %24 = vector.broadcast %23 : vector<1x32xf32> to vector<8x32xf32>
    %25 = arith.mulf %24, %22 : vector<8x32xf32>
    %cst_12 = arith.constant 9.99999997E-7 : f32
    %26 = vector.broadcast %cst_12 : f32 to vector<8x1xf32>
    %27 = arith.addf %20, %26 : vector<8x1xf32>
    %28 = vector.broadcast %27 : vector<8x1xf32> to vector<8x32xf32>
    %29 = arith.divf %25, %28 : vector<8x32xf32>
    %30 = vector.shape_cast %8 : vector<32xf32> to vector<1x32xf32>
    %31 = vector.broadcast %30 : vector<1x32xf32> to vector<8x32xf32>
    %32 = arith.addf %29, %31 : vector<8x32xf32>
    %33 = arith.truncf %32 : vector<8x32xf32> to vector<8x32xbf16>
    %c0_13 = arith.constant 0 : index
    %c0_14 = arith.constant 0 : index
    %34 = vector.load %arg5[%c0_13, %c0_14] : memref<32x96xbf16, #tpu.memory_space<vmem>>, vector<32x96xbf16>
    %cst_15 = arith.constant dense<0.000000e+00> : vector<8x96xf32>
    %35 = tpu.matmul %33, %34, %cst_15 {dimension_numbers = #tpu.dot_dimension_numbers<[1], [0], [0], [1], [0, 0, 1, 1], [], []>} : vector<8x32xbf16>, vector<32x96xbf16>, vector<8x96xf32> -> vector<8x96xf32>
    %c0_16 = arith.constant 0 : index
    %c0_17 = arith.constant 0 : index
    %36 = vector.load %arg6[%c0_16, %c0_17] : memref<1x96xf32, #tpu.memory_space<vmem>>, vector<1x96xf32>
    %37 = vector.shape_cast %36 : vector<1x96xf32> to vector<96xf32>
    %38 = vector.shape_cast %37 : vector<96xf32> to vector<1x96xf32>
    %39 = vector.broadcast %38 : vector<1x96xf32> to vector<8x96xf32>
    %40 = arith.addf %35, %39 : vector<8x96xf32>
    %41 = vector.extract_strided_slice %40 {offsets = [0, 0], sizes = [8, 32], strides = [1, 1]} : vector<8x96xf32> to vector<8x32xf32>
    %cst_18 = arith.constant 0.353553385 : f32
    %42 = vector.broadcast %cst_18 : f32 to vector<8x32xf32>
    %43 = arith.mulf %41, %42 : vector<8x32xf32>
    %44 = arith.truncf %43 : vector<8x32xf32> to vector<8x32xbf16>
    %45 = vector.extract_strided_slice %40 {offsets = [0, 32], sizes = [8, 32], strides = [1, 1]} : vector<8x96xf32> to vector<8x32xf32>
    %46 = arith.truncf %45 : vector<8x32xf32> to vector<8x32xbf16>
    %47 = vector.extract_strided_slice %40 {offsets = [0, 64], sizes = [8, 32], strides = [1, 1]} : vector<8x96xf32> to vector<8x32xf32>
    %48 = arith.truncf %47 : vector<8x32xf32> to vector<8x32xbf16>
    %cst_19 = arith.constant 0.000000e+00 : f32
    %49 = vector.broadcast %cst_19 : f32 to vector<8x32xf32>
    %50 = vector.extract_strided_slice %44 {offsets = [0, 0], sizes = [8, 8], strides = [1, 1]} : vector<8x32xbf16> to vector<8x8xbf16>
    %51 = vector.extract_strided_slice %46 {offsets = [0, 0], sizes = [8, 8], strides = [1, 1]} : vector<8x32xbf16> to vector<8x8xbf16>
    %52 = tpu.transpose %51, [1, 0] : vector<8x8xbf16> -> vector<8x8xbf16>
    %cst_20 = arith.constant dense<0.000000e+00> : vector<8x8xf32>
    %53 = tpu.matmul %50, %52, %cst_20 {dimension_numbers = #tpu.dot_dimension_numbers<[1], [0], [0], [1], [0, 0, 1, 1], [], []>} : vector<8x8xbf16>, vector<8x8xbf16>, vector<8x8xf32> -> vector<8x8xf32>
    %54 = arith.addf %53, %4 : vector<8x8xf32>
    %cst_21 = arith.constant dense<0xFF800000> : vector<8xf32>
    %55 = vector.multi_reduction <maximumf>, %54, %cst_21 [1] : vector<8x8xf32> to vector<8xf32>
    %56 = vector.shape_cast %55 : vector<8xf32> to vector<8x1xf32>
    %57 = vector.broadcast %56 : vector<8x1xf32> to vector<8x8xf32>
    %58 = arith.subf %54, %57 : vector<8x8xf32>
    %59 = math.exp %58 : vector<8x8xf32>
    %cst_22 = arith.constant dense<0.000000e+00> : vector<8xf32>
    %60 = vector.multi_reduction <add>, %59, %cst_22 [1] : vector<8x8xf32> to vector<8xf32>
    %61 = vector.shape_cast %60 : vector<8xf32> to vector<8x1xf32>
    %62 = arith.truncf %59 : vector<8x8xf32> to vector<8x8xbf16>
    %63 = vector.extract_strided_slice %48 {offsets = [0, 0], sizes = [8, 8], strides = [1, 1]} : vector<8x32xbf16> to vector<8x8xbf16>
    %cst_23 = arith.constant dense<0.000000e+00> : vector<8x8xf32>
    %64 = tpu.matmul %62, %63, %cst_23 {dimension_numbers = #tpu.dot_dimension_numbers<[1], [0], [0], [1], [0, 0, 1, 1], [], []>} : vector<8x8xbf16>, vector<8x8xbf16>, vector<8x8xf32> -> vector<8x8xf32>
    %65 = tpu.reciprocal %61 {approx = true} : vector<8x1xf32> -> vector<8x1xf32>
    %66 = vector.broadcast %65 : vector<8x1xf32> to vector<8x8xf32>
    %67 = arith.mulf %64, %66 : vector<8x8xf32>
    %68 = arith.truncf %67 : vector<8x8xf32> to vector<8x8xbf16>
    %c0_24 = arith.constant 0 : index
    %c0_25 = arith.constant 0 : index
    %69 = vector.load %arg7[%c0_24, %c0_25] : memref<32x32xbf16, #tpu.memory_space<vmem>>, vector<8x32xbf16>
    %cst_26 = arith.constant dense<0.000000e+00> : vector<8x32xf32>
    %70 = tpu.matmul %68, %69, %cst_26 {dimension_numbers = #tpu.dot_dimension_numbers<[1], [0], [0], [1], [0, 0, 1, 1], [], []>} : vector<8x8xbf16>, vector<8x32xbf16>, vector<8x32xf32> -> vector<8x32xf32>
    %71 = arith.addf %49, %70 : vector<8x32xf32>
    %72 = vector.extract_strided_slice %44 {offsets = [0, 8], sizes = [8, 8], strides = [1, 1]} : vector<8x32xbf16> to vector<8x8xbf16>
    %73 = vector.extract_strided_slice %46 {offsets = [0, 8], sizes = [8, 8], strides = [1, 1]} : vector<8x32xbf16> to vector<8x8xbf16>
    %74 = tpu.transpose %73, [1, 0] : vector<8x8xbf16> -> vector<8x8xbf16>
    %cst_27 = arith.constant dense<0.000000e+00> : vector<8x8xf32>
    %75 = tpu.matmul %72, %74, %cst_27 {dimension_numbers = #tpu.dot_dimension_numbers<[1], [0], [0], [1], [0, 0, 1, 1], [], []>} : vector<8x8xbf16>, vector<8x8xbf16>, vector<8x8xf32> -> vector<8x8xf32>
    %76 = arith.addf %75, %4 : vector<8x8xf32>
    %cst_28 = arith.constant dense<0xFF800000> : vector<8xf32>
    %77 = vector.multi_reduction <maximumf>, %76, %cst_28 [1] : vector<8x8xf32> to vector<8xf32>
    %78 = vector.shape_cast %77 : vector<8xf32> to vector<8x1xf32>
    %79 = vector.broadcast %78 : vector<8x1xf32> to vector<8x8xf32>
    %80 = arith.subf %76, %79 : vector<8x8xf32>
    %81 = math.exp %80 : vector<8x8xf32>
    %cst_29 = arith.constant dense<0.000000e+00> : vector<8xf32>
    %82 = vector.multi_reduction <add>, %81, %cst_29 [1] : vector<8x8xf32> to vector<8xf32>
    %83 = vector.shape_cast %82 : vector<8xf32> to vector<8x1xf32>
    %84 = arith.truncf %81 : vector<8x8xf32> to vector<8x8xbf16>
    %85 = vector.extract_strided_slice %48 {offsets = [0, 8], sizes = [8, 8], strides = [1, 1]} : vector<8x32xbf16> to vector<8x8xbf16>
    %cst_30 = arith.constant dense<0.000000e+00> : vector<8x8xf32>
    %86 = tpu.matmul %84, %85, %cst_30 {dimension_numbers = #tpu.dot_dimension_numbers<[1], [0], [0], [1], [0, 0, 1, 1], [], []>} : vector<8x8xbf16>, vector<8x8xbf16>, vector<8x8xf32> -> vector<8x8xf32>
    %87 = tpu.reciprocal %83 {approx = true} : vector<8x1xf32> -> vector<8x1xf32>
    %88 = vector.broadcast %87 : vector<8x1xf32> to vector<8x8xf32>
    %89 = arith.mulf %86, %88 : vector<8x8xf32>
    %90 = arith.truncf %89 : vector<8x8xf32> to vector<8x8xbf16>
    %c8 = arith.constant 8 : index
    %c0_31 = arith.constant 0 : index
    %91 = vector.load %arg7[%c8, %c0_31] : memref<32x32xbf16, #tpu.memory_space<vmem>>, vector<8x32xbf16>
    %cst_32 = arith.constant dense<0.000000e+00> : vector<8x32xf32>
    %92 = tpu.matmul %90, %91, %cst_32 {dimension_numbers = #tpu.dot_dimension_numbers<[1], [0], [0], [1], [0, 0, 1, 1], [], []>} : vector<8x8xbf16>, vector<8x32xbf16>, vector<8x32xf32> -> vector<8x32xf32>
    %93 = arith.addf %71, %92 : vector<8x32xf32>
    %94 = vector.extract_strided_slice %44 {offsets = [0, 16], sizes = [8, 8], strides = [1, 1]} : vector<8x32xbf16> to vector<8x8xbf16>
    %95 = vector.extract_strided_slice %46 {offsets = [0, 16], sizes = [8, 8], strides = [1, 1]} : vector<8x32xbf16> to vector<8x8xbf16>
    %96 = tpu.transpose %95, [1, 0] : vector<8x8xbf16> -> vector<8x8xbf16>
    %cst_33 = arith.constant dense<0.000000e+00> : vector<8x8xf32>
    %97 = tpu.matmul %94, %96, %cst_33 {dimension_numbers = #tpu.dot_dimension_numbers<[1], [0], [0], [1], [0, 0, 1, 1], [], []>} : vector<8x8xbf16>, vector<8x8xbf16>, vector<8x8xf32> -> vector<8x8xf32>
    %98 = arith.addf %97, %4 : vector<8x8xf32>
    %cst_34 = arith.constant dense<0xFF800000> : vector<8xf32>
    %99 = vector.multi_reduction <maximumf>, %98, %cst_34 [1] : vector<8x8xf32> to vector<8xf32>
    %100 = vector.shape_cast %99 : vector<8xf32> to vector<8x1xf32>
    %101 = vector.broadcast %100 : vector<8x1xf32> to vector<8x8xf32>
    %102 = arith.subf %98, %101 : vector<8x8xf32>
    %103 = math.exp %102 : vector<8x8xf32>
    %cst_35 = arith.constant dense<0.000000e+00> : vector<8xf32>
    %104 = vector.multi_reduction <add>, %103, %cst_35 [1] : vector<8x8xf32> to vector<8xf32>
    %105 = vector.shape_cast %104 : vector<8xf32> to vector<8x1xf32>
    %106 = arith.truncf %103 : vector<8x8xf32> to vector<8x8xbf16>
    %107 = vector.extract_strided_slice %48 {offsets = [0, 16], sizes = [8, 8], strides = [1, 1]} : vector<8x32xbf16> to vector<8x8xbf16>
    %cst_36 = arith.constant dense<0.000000e+00> : vector<8x8xf32>
    %108 = tpu.matmul %106, %107, %cst_36 {dimension_numbers = #tpu.dot_dimension_numbers<[1], [0], [0], [1], [0, 0, 1, 1], [], []>} : vector<8x8xbf16>, vector<8x8xbf16>, vector<8x8xf32> -> vector<8x8xf32>
    %109 = tpu.reciprocal %105 {approx = true} : vector<8x1xf32> -> vector<8x1xf32>
    %110 = vector.broadcast %109 : vector<8x1xf32> to vector<8x8xf32>
    %111 = arith.mulf %108, %110 : vector<8x8xf32>
    %112 = arith.truncf %111 : vector<8x8xf32> to vector<8x8xbf16>
    %c16 = arith.constant 16 : index
    %c0_37 = arith.constant 0 : index
    %113 = vector.load %arg7[%c16, %c0_37] : memref<32x32xbf16, #tpu.memory_space<vmem>>, vector<8x32xbf16>
    %cst_38 = arith.constant dense<0.000000e+00> : vector<8x32xf32>
    %114 = tpu.matmul %112, %113, %cst_38 {dimension_numbers = #tpu.dot_dimension_numbers<[1], [0], [0], [1], [0, 0, 1, 1], [], []>} : vector<8x8xbf16>, vector<8x32xbf16>, vector<8x32xf32> -> vector<8x32xf32>
    %115 = arith.addf %93, %114 : vector<8x32xf32>
    %116 = vector.extract_strided_slice %44 {offsets = [0, 24], sizes = [8, 8], strides = [1, 1]} : vector<8x32xbf16> to vector<8x8xbf16>
    %117 = vector.extract_strided_slice %46 {offsets = [0, 24], sizes = [8, 8], strides = [1, 1]} : vector<8x32xbf16> to vector<8x8xbf16>
    %118 = tpu.transpose %117, [1, 0] : vector<8x8xbf16> -> vector<8x8xbf16>
    %cst_39 = arith.constant dense<0.000000e+00> : vector<8x8xf32>
    %119 = tpu.matmul %116, %118, %cst_39 {dimension_numbers = #tpu.dot_dimension_numbers<[1], [0], [0], [1], [0, 0, 1, 1], [], []>} : vector<8x8xbf16>, vector<8x8xbf16>, vector<8x8xf32> -> vector<8x8xf32>
    %120 = arith.addf %119, %4 : vector<8x8xf32>
    %cst_40 = arith.constant dense<0xFF800000> : vector<8xf32>
    %121 = vector.multi_reduction <maximumf>, %120, %cst_40 [1] : vector<8x8xf32> to vector<8xf32>
    %122 = vector.shape_cast %121 : vector<8xf32> to vector<8x1xf32>
    %123 = vector.broadcast %122 : vector<8x1xf32> to vector<8x8xf32>
    %124 = arith.subf %120, %123 : vector<8x8xf32>
    %125 = math.exp %124 : vector<8x8xf32>
    %cst_41 = arith.constant dense<0.000000e+00> : vector<8xf32>
    %126 = vector.multi_reduction <add>, %125, %cst_41 [1] : vector<8x8xf32> to vector<8xf32>
    %127 = vector.shape_cast %126 : vector<8xf32> to vector<8x1xf32>
    %128 = arith.truncf %125 : vector<8x8xf32> to vector<8x8xbf16>
    %129 = vector.extract_strided_slice %48 {offsets = [0, 24], sizes = [8, 8], strides = [1, 1]} : vector<8x32xbf16> to vector<8x8xbf16>
    %cst_42 = arith.constant dense<0.000000e+00> : vector<8x8xf32>
    %130 = tpu.matmul %128, %129, %cst_42 {dimension_numbers = #tpu.dot_dimension_numbers<[1], [0], [0], [1], [0, 0, 1, 1], [], []>} : vector<8x8xbf16>, vector<8x8xbf16>, vector<8x8xf32> -> vector<8x8xf32>
    %131 = tpu.reciprocal %127 {approx = true} : vector<8x1xf32> -> vector<8x1xf32>
    %132 = vector.broadcast %131 : vector<8x1xf32> to vector<8x8xf32>
    %133 = arith.mulf %130, %132 : vector<8x8xf32>
    %134 = arith.truncf %133 : vector<8x8xf32> to vector<8x8xbf16>
    %c24 = arith.constant 24 : index
    %c0_43 = arith.constant 0 : index
    %135 = vector.load %arg7[%c24, %c0_43] : memref<32x32xbf16, #tpu.memory_space<vmem>>, vector<8x32xbf16>
    %cst_44 = arith.constant dense<0.000000e+00> : vector<8x32xf32>
    %136 = tpu.matmul %134, %135, %cst_44 {dimension_numbers = #tpu.dot_dimension_numbers<[1], [0], [0], [1], [0, 0, 1, 1], [], []>} : vector<8x8xbf16>, vector<8x32xbf16>, vector<8x32xf32> -> vector<8x32xf32>
    %137 = arith.addf %115, %136 : vector<8x32xf32>
    %138 = arith.addf %1, %137 : vector<8x32xf32>
    %c0_45 = arith.constant 0 : index
    %c0_46 = arith.constant 0 : index
    %139 = vector.load %arg8[%c0_45, %c0_46] : memref<1x32xf32, #tpu.memory_space<vmem>>, vector<1x32xf32>
    %140 = vector.shape_cast %139 : vector<1x32xf32> to vector<32xf32>
    %141 = vector.shape_cast %140 : vector<32xf32> to vector<1x32xf32>
    %142 = vector.broadcast %141 : vector<1x32xf32> to vector<8x32xf32>
    %143 = arith.addf %138, %142 : vector<8x32xf32>
    %c0_47 = arith.constant 0 : index
    %c0_48 = arith.constant 0 : index
    %144 = vector.load %arg9[%c0_47, %c0_48] : memref<1x32xf32, #tpu.memory_space<vmem>>, vector<1x32xf32>
    %145 = vector.shape_cast %144 : vector<1x32xf32> to vector<32xf32>
    %c0_49 = arith.constant 0 : index
    %c0_50 = arith.constant 0 : index
    %146 = vector.load %arg10[%c0_49, %c0_50] : memref<1x32xf32, #tpu.memory_space<vmem>>, vector<1x32xf32>
    %147 = vector.shape_cast %146 : vector<1x32xf32> to vector<32xf32>
    %cst_51 = arith.constant dense<0.000000e+00> : vector<8xf32>
    %148 = vector.multi_reduction <add>, %143, %cst_51 [1] : vector<8x32xf32> to vector<8xf32>
    %149 = vector.shape_cast %148 : vector<8xf32> to vector<8x1xf32>
    %cst_52 = arith.constant 3.200000e+01 : f32
    %150 = vector.broadcast %cst_52 : f32 to vector<8x1xf32>
    %151 = arith.divf %149, %150 : vector<8x1xf32>
    %152 = vector.broadcast %151 : vector<8x1xf32> to vector<8x32xf32>
    %153 = arith.subf %143, %152 : vector<8x32xf32>
    %154 = arith.mulf %153, %153 : vector<8x32xf32>
    %cst_53 = arith.constant dense<0.000000e+00> : vector<8xf32>
    %155 = vector.multi_reduction <add>, %154, %cst_53 [1] : vector<8x32xf32> to vector<8xf32>
    %156 = vector.shape_cast %155 : vector<8xf32> to vector<8x1xf32>
    %cst_54 = arith.constant 3.100000e+01 : f32
    %157 = vector.broadcast %cst_54 : f32 to vector<8x1xf32>
    %158 = arith.divf %156, %157 : vector<8x1xf32>
    %159 = math.sqrt %158 : vector<8x1xf32>
    %160 = vector.broadcast %149 : vector<8x1xf32> to vector<8x32xf32>
    %161 = arith.subf %143, %160 : vector<8x32xf32>
    %162 = vector.shape_cast %145 : vector<32xf32> to vector<1x32xf32>
    %163 = vector.broadcast %162 : vector<1x32xf32> to vector<8x32xf32>
    %164 = arith.mulf %163, %161 : vector<8x32xf32>
    %cst_55 = arith.constant 9.99999997E-7 : f32
    %165 = vector.broadcast %cst_55 : f32 to vector<8x1xf32>
    %166 = arith.addf %159, %165 : vector<8x1xf32>
    %167 = vector.broadcast %166 : vector<8x1xf32> to vector<8x32xf32>
    %168 = arith.divf %164, %167 : vector<8x32xf32>
    %169 = vector.shape_cast %147 : vector<32xf32> to vector<1x32xf32>
    %170 = vector.broadcast %169 : vector<1x32xf32> to vector<8x32xf32>
    %171 = arith.addf %168, %170 : vector<8x32xf32>
    %172 = arith.truncf %171 : vector<8x32xf32> to vector<8x32xbf16>
    %cst_56 = arith.constant 0.000000e+00 : f32
    %173 = vector.broadcast %cst_56 : f32 to vector<8x32xf32>
    %c0_57 = arith.constant 0 : index
    %c0_58 = arith.constant 0 : index
    %174 = vector.load %arg11[%c0_57, %c0_58] : memref<32x64xbf16, #tpu.memory_space<vmem>>, vector<32x64xbf16>
    %cst_59 = arith.constant dense<0.000000e+00> : vector<8x64xf32>
    %175 = tpu.matmul %172, %174, %cst_59 {dimension_numbers = #tpu.dot_dimension_numbers<[1], [0], [0], [1], [0, 0, 1, 1], [], []>} : vector<8x32xbf16>, vector<32x64xbf16>, vector<8x64xf32> -> vector<8x64xf32>
    %c0_60 = arith.constant 0 : index
    %c0_61 = arith.constant 0 : index
    %176 = vector.load %arg12[%c0_60, %c0_61] : memref<1x64xf32, #tpu.memory_space<vmem>>, vector<1x64xf32>
    %177 = vector.shape_cast %176 : vector<1x64xf32> to vector<64xf32>
    %178 = vector.shape_cast %177 : vector<64xf32> to vector<1x64xf32>
    %179 = vector.broadcast %178 : vector<1x64xf32> to vector<8x64xf32>
    %180 = arith.addf %175, %179 : vector<8x64xf32>
    %cst_62 = arith.constant 0.000000e+00 : f32
    %181 = vector.broadcast %cst_62 : f32 to vector<8x64xf32>
    %182 = arith.maximumf %180, %181 : vector<8x64xf32>
    %183 = arith.truncf %182 : vector<8x64xf32> to vector<8x64xbf16>
    %c0_63 = arith.constant 0 : index
    %c0_64 = arith.constant 0 : index
    %184 = vector.load %arg13[%c0_63, %c0_64] : memref<64x32xbf16, #tpu.memory_space<vmem>>, vector<64x32xbf16>
    %cst_65 = arith.constant dense<0.000000e+00> : vector<8x32xf32>
    %185 = tpu.matmul %183, %184, %cst_65 {dimension_numbers = #tpu.dot_dimension_numbers<[1], [0], [0], [1], [0, 0, 1, 1], [], []>} : vector<8x64xbf16>, vector<64x32xbf16>, vector<8x32xf32> -> vector<8x32xf32>
    %186 = arith.addf %173, %185 : vector<8x32xf32>
    %187 = arith.addf %143, %186 : vector<8x32xf32>
    %c0_66 = arith.constant 0 : index
    %c0_67 = arith.constant 0 : index
    %188 = vector.load %arg14[%c0_66, %c0_67] : memref<1x32xf32, #tpu.memory_space<vmem>>, vector<1x32xf32>
    %189 = vector.shape_cast %188 : vector<1x32xf32> to vector<32xf32>
    %190 = vector.shape_cast %189 : vector<32xf32> to vector<1x32xf32>
    %191 = vector.broadcast %190 : vector<1x32xf32> to vector<8x32xf32>
    %192 = arith.addf %187, %191 : vector<8x32xf32>
    %c0_68 = arith.constant 0 : index
    %c0_69 = arith.constant 0 : index
    %c0_70 = arith.constant 0 : index
    %193 = vector.load %arg15[%c0_68, %c0_69, %c0_70] : memref<1x8x32xf32, #tpu.memory_space<vmem>>, vector<1x8x32xf32>
    %194 = vector.shape_cast %193 : vector<1x8x32xf32> to vector<8x32xf32>
    %195 = vector.shape_cast %192 : vector<8x32xf32> to vector<1x8x32xf32>
    tpu.vector_store %arg15[%c0_68, %c0_69, %c0_70], %195 {strides = array<i32>} : memref<1x8x32xf32, #tpu.memory_space<vmem>>, vector<1x8x32xf32>,
    return
  }
  func.func @transform_0(%arg0: i32) -> (i32, i32, i32) {
    %c0_i32 = arith.constant 0 : i32
    %c0_i32_0 = arith.constant 0 : i32
    %c0_i32_1 = arith.constant 0 : i32
    return %arg0, %c0_i32, %c0_i32_0 : i32, i32, i32
  }
  func.func @transform_1(%arg0: i32) -> (i32, i32, i32) {
    %c0_i32 = arith.constant 0 : i32
    %c0_i32_0 = arith.constant 0 : i32
    %c0_i32_1 = arith.constant 0 : i32
    return %arg0, %c0_i32, %c0_i32_0 : i32, i32, i32
  }
  func.func @transform_2(%arg0: i32) -> (i32, i32) {
    %c0_i32 = arith.constant 0 : i32
    %c0_i32_0 = arith.constant 0 : i32
    %c0_i32_1 = arith.constant 0 : i32
    return %c0_i32, %c0_i32_0 : i32, i32
  }
  func.func @transform_3(%arg0: i32) -> (i32, i32) {
    %c0_i32 = arith.constant 0 : i32
    %c0_i32_0 = arith.constant 0 : i32
    %c0_i32_1 = arith.constant 0 : i32
    return %c0_i32, %c0_i32_0 : i32, i32
  }
  func.func @transform_4(%arg0: i32) -> (i32, i32) {
    %c0_i32 = arith.constant 0 : i32
    %c0_i32_0 = arith.constant 0 : i32
    %c0_i32_1 = arith.constant 0 : i32
    return %c0_i32, %c0_i32_0 : i32, i32
  }
  func.func @transform_5(%arg0: i32) -> (i32, i32) {
    %c0_i32 = arith.constant 0 : i32
    %c0_i32_0 = arith.constant 0 : i32
    %c0_i32_1 = arith.constant 0 : i32
    return %c0_i32, %c0_i32_0 : i32, i32
  }
  func.func @transform_6(%arg0: i32) -> (i32, i32) {
    %c0_i32 = arith.constant 0 : i32
    %c0_i32_0 = arith.constant 0 : i32
    %c0_i32_1 = arith.constant 0 : i32
    return %c0_i32, %c0_i32_0 : i32, i32
  }
  func.func @transform_7(%arg0: i32) -> (i32, i32) {
    %c0_i32 = arith.constant 0 : i32
    %c0_i32_0 = arith.constant 0 : i32
    %c0_i32_1 = arith.constant 0 : i32
    return %c0_i32, %c0_i32_0 : i32, i32
  }
  func.func @transform_8(%arg0: i32) -> (i32, i32) {
    %c0_i32 = arith.constant 0 : i32
    %c0_i32_0 = arith.constant 0 : i32
    %c0_i32_1 = arith.constant 0 : i32
    return %c0_i32, %c0_i32_0 : i32, i32
  }
  func.func @transform_9(%arg0: i32) -> (i32, i32) {
    %c0_i32 = arith.constant 0 : i32
    %c0_i32_0 = arith.constant 0 : i32
    %c0_i32_1 = arith.constant 0 : i32
    return %c0_i32, %c0_i32_0 : i32, i32
  }
  func.func @transform_10(%arg0: i32) -> (i32, i32) {
    %c0_i32 = arith.constant 0 : i32
    %c0_i32_0 = arith.constant 0 : i32
    %c0_i32_1 = arith.constant 0 : i32
    return %c0_i32, %c0_i32_0 : i32, i32
  }
  func.func @transform_11(%arg0: i32) -> (i32, i32) {
    %c0_i32 = arith.constant 0 : i32
    %c0_i32_0 = arith.constant 0 : i32
    %c0_i32_1 = arith.constant 0 : i32
    return %c0_i32, %c0_i32_0 : i32, i32
  }
  func.func @transform_12(%arg0: i32) -> (i32, i32) {
    %c0_i32 = arith.constant 0 : i32
    %c0_i32_0 = arith.constant 0 : i32
    %c0_i32_1 = arith.constant 0 : i32
    return %c0_i32, %c0_i32_0 : i32, i32
  }
  func.func @transform_13(%arg0: i32) -> (i32, i32) {
    %c0_i32 = arith.constant 0 : i32
    %c0_i32_0 = arith.constant 0 : i32
    %c0_i32_1 = arith.constant 0 : i32
    return %c0_i32, %c0_i32_0 : i32, i32
  }
  func.func @transform_14(%arg0: i32) -> (i32, i32, i32) {
    %c0_i32 = arith.constant 0 : i32
    %c0_i32_0 = arith.constant 0 : i32
    %c0_i32_1 = arith.constant 0 : i32
    return %arg0, %c0_i32, %c0_i32_0 : i32, i32, i32
  }
}

module attributes {stable_mosaic.version = 11 : i64} {
  func.func @encoder_layer_kernel(%arg0: i32, %arg1: memref<1x8x32xf32, #tpu.memory_space<vmem>>, %arg2: memref<1x8x8xbf16, #tpu.memory_space<vmem>>, %arg3: memref<1x32xf32, #tpu.memory_space<vmem>>, %arg4: memref<1x32xf32, #tpu.memory_space<vmem>>, %arg5: memref<32x96xbf16, #tpu.memory_space<vmem>>, %arg6: memref<1x96xf32, #tpu.memory_space<vmem>>, %arg7: memref<32x32xbf16, #tpu.memory_space<vmem>>, %arg8: memref<1x32xf32, #tpu.memory_space<vmem>>, %arg9: memref<1x32xf32, #tpu.memory_space<vmem>>, %arg10: memref<1x32xf32, #tpu.memory_space<vmem>>, %arg11: memref<32x64xbf16, #tpu.memory_space<vmem>>, %arg12: memref<1x64xf32, #tpu.memory_space<vmem>>, %arg13: memref<64x32xbf16, #tpu.memory_space<vmem>>, %arg14: memref<1x32xf32, #tpu.memory_space<vmem>>, %arg15: memref<1x8x32xf32, #tpu.memory_space<vmem>>) attributes {dimension_semantics = [#tpu.dimension_semantics<parallel>], iteration_bounds = array<i64: 2>, scalar_prefetch = 0 : i64, scratch_operands = 0 : i64, tpu.core_type = #tpu.core_type<tc>, window_params = [{transform_indices = @transform_0, window_bounds = array<i64: 1, 8, 32>}, {transform_indices = @transform_1, window_bounds = array<i64: 1, 8, 8>}, {pipeline_mode = #tpu.pipeline_mode<synchronous>, transform_indices = @transform_2, window_bounds = array<i64: 1, 32>}, {pipeline_mode = #tpu.pipeline_mode<synchronous>, transform_indices = @transform_3, window_bounds = array<i64: 1, 32>}, {pipeline_mode = #tpu.pipeline_mode<synchronous>, transform_indices = @transform_4, window_bounds = array<i64: 32, 96>}, {pipeline_mode = #tpu.pipeline_mode<synchronous>, transform_indices = @transform_5, window_bounds = array<i64: 1, 96>}, {pipeline_mode = #tpu.pipeline_mode<synchronous>, transform_indices = @transform_6, window_bounds = array<i64: 32, 32>}, {pipeline_mode = #tpu.pipeline_mode<synchronous>, transform_indices = @transform_7, window_bounds = array<i64: 1, 32>}, {pipeline_mode = #tpu.pipeline_mode<synchronous>, transform_indices = @transform_8, window_bounds = array<i64: 1, 32>}, {pipeline_mode = #tpu.pipeline_mode<synchronous>, transform_indices = @transform_9, window_bounds = array<i64: 1, 32>}, {pipeline_mode = #tpu.pipeline_mode<synchronous>, transform_indices = @transform_10, window_bounds = array<i64: 32, 64>}, {pipeline_mode = #tpu.pipeline_mode<synchronous>, transform_indices = @transform_11, window_bounds = array<i64: 1, 64>}, {pipeline_mode = #tpu.pipeline_mode<synchronous>, transform_indices = @transform_12, window_bounds = array<i64: 64, 32>}, {pipeline_mode = #tpu.pipeline_mode<synchronous>, transform_indices = @transform_13, window_bounds = array<i64: 1, 32>}, {transform_indices = @transform_14, window_bounds = array<i64: 1, 8, 32>}]} {
    %c0 = arith.constant 0 : index
    %c0_0 = arith.constant 0 : index
    %c0_1 = arith.constant 0 : index
    %0 = vector.load %arg1[%c0, %c0_0, %c0_1] : memref<1x8x32xf32, #tpu.memory_space<vmem>>, vector<1x8x32xf32>
    %1 = vector.shape_cast %0 : vector<1x8x32xf32> to vector<8x32xf32>
    %c0_2 = arith.constant 0 : index
    %c0_3 = arith.constant 0 : index
    %c0_4 = arith.constant 0 : index
    %2 = vector.load %arg2[%c0_2, %c0_3, %c0_4] : memref<1x8x8xbf16, #tpu.memory_space<vmem>>, vector<1x8x8xbf16>
    %3 = vector.shape_cast %2 : vector<1x8x8xbf16> to vector<8x8xbf16>
    %4 = arith.extf %3 : vector<8x8xbf16> to vector<8x8xf32>
    %c0_5 = arith.constant 0 : index
    %c0_6 = arith.constant 0 : index
    %5 = vector.load %arg3[%c0_5, %c0_6] : memref<1x32xf32, #tpu.memory_space<vmem>>, vector<1x32xf32>
    %6 = vector.shape_cast %5 : vector<1x32xf32> to vector<32xf32>
    %c0_7 = arith.constant 0 : index
    %c0_8 = arith.constant 0 : index
    %7 = vector.load %arg4[%c0_7, %c0_8] : memref<1x32xf32, #tpu.memory_space<vmem>>, vector<1x32xf32>
    %8 = vector.shape_cast %7 : vector<1x32xf32> to vector<32xf32>
    %cst = arith.constant dense<0.000000e+00> : vector<8xf32>
    %9 = vector.multi_reduction <add>, %1, %cst [1] : vector<8x32xf32> to vector<8xf32>
    %10 = vector.shape_cast %9 : vector<8xf32> to vector<8x1xf32>
    %cst_9 = arith.constant 3.200000e+01 : f32
    %11 = vector.broadcast %cst_9 : f32 to vector<8x1xf32>
    %12 = arith.divf %10, %11 : vector<8x1xf32>
    %13 = vector.broadcast %12 : vector<8x1xf32> to vector<8x32xf32>
    %14 = arith.subf %1, %13 : vector<8x32xf32>
    %15 = arith.mulf %14, %14 : vector<8x32xf32>
    %cst_10 = arith.constant dense<0.000000e+00> : vector<8xf32>
    %16 = vector.multi_reduction <add>, %15, %cst_10 [1] : vector<8x32xf32> to vector<8xf32>
    %17 = vector.shape_cast %16 : vector<8xf32> to vector<8x1xf32>
    %cst_11 = arith.constant 3.100000e+01 : f32
    %18 = vector.broadcast %cst_11 : f32 to vector<8x1xf32>
    %19 = arith.divf %17, %18 : vector<8x1xf32>
    %20 = math.sqrt %19 : vector<8x1xf32>
    %21 = vector.broadcast %10 : vector<8x1xf32> to vector<8x32xf32>
    %22 = arith.subf %1, %21 : vector<8x32xf32>
    %23 = vector.shape_cast %6 : vector<32xf32> to vector<1x32xf32>
    %24 = vector.broadcast %23 : vector<1x32xf32> to vector<8x32xf32>
    %25 = arith.mulf %24, %22 : vector<8x32xf32>
    %cst_12 = arith.constant 9.99999997E-7 : f32
    %26 = vector.broadcast %cst_12 : f32 to vector<8x1xf32>
    %27 = arith.addf %20, %26 : vector<8x1xf32>
    %28 = vector.broadcast %27 : vector<8x1xf32> to vector<8x32xf32>
    %29 = arith.divf %25, %28 : vector<8x32xf32>
    %30 = vector.shape_cast %8 : vector<32xf32> to vector<1x32xf32>
    %31 = vector.broadcast %30 : vector<1x32xf32> to vector<8x32xf32>
    %32 = arith.addf %29, %31 : vector<8x32xf32>
    %33 = arith.truncf %32 : vector<8x32xf32> to vector<8x32xbf16>
    %c0_13 = arith.constant 0 : index
    %c0_14 = arith.constant 0 : index
    %34 = vector.load %arg5[%c0_13, %c0_14] : memref<32x96xbf16, #tpu.memory_space<vmem>>, vector<32x96xbf16>
    %cst_15 = arith.constant dense<0.000000e+00> : vector<8x96xf32>
    %35 = tpu.matmul %33, %34, %cst_15 {dimension_numbers = #tpu.dot_dimension_numbers<[1], [0], [0], [1], [0, 0, 1, 1], [], []>} : vector<8x32xbf16>, vector<32x96xbf16>, vector<8x96xf32> -> vector<8x96xf32>
    %c0_16 = arith.constant 0 : index
    %c0_17 = arith.constant 0 : index
    %36 = vector.load %arg6[%c0_16, %c0_17] : memref<1x96xf32, #tpu.memory_space<vmem>>, vector<1x96xf32>
    %37 = vector.shape_cast %36 : vector<1x96xf32> to vector<96xf32>
    %38 = vector.shape_cast %37 : vector<96xf32> to vector<1x96xf32>
    %39 = vector.broadcast %38 : vector<1x96xf32> to vector<8x96xf32>
    %40 = arith.addf %35, %39 : vector<8x96xf32>
    %41 = vector.extract_strided_slice %40 {offsets = [0, 0], sizes = [8, 32], strides = [1, 1]} : vector<8x96xf32> to vector<8x32xf32>
    %cst_18 = arith.constant 0.353553385 : f32
    %42 = vector.broadcast %cst_18 : f32 to vector<8x32xf32>
    %43 = arith.mulf %41, %42 : vector<8x32xf32>
    %44 = arith.truncf %43 : vector<8x32xf32> to vector<8x32xbf16>
    %45 = vector.extract_strided_slice %40 {offsets = [0, 32], sizes = [8, 32], strides = [1, 1]} : vector<8x96xf32> to vector<8x32xf32>
    %46 = arith.truncf %45 : vector<8x32xf32> to vector<8x32xbf16>
    %47 = vector.extract_strided_slice %40 {offsets = [0, 64], sizes = [8, 32], strides = [1, 1]} : vector<8x96xf32> to vector<8x32xf32>
    %48 = arith.truncf %47 : vector<8x32xf32> to vector<8x32xbf16>
    %cst_19 = arith.constant 0.000000e+00 : f32
    %49 = vector.broadcast %cst_19 : f32 to vector<8x32xf32>
    %50 = vector.extract_strided_slice %44 {offsets = [0, 0], sizes = [8, 8], strides = [1, 1]} : vector<8x32xbf16> to vector<8x8xbf16>
    %51 = vector.extract_strided_slice %46 {offsets = [0, 0], sizes = [8, 8], strides = [1, 1]} : vector<8x32xbf16> to vector<8x8xbf16>
    %52 = tpu.transpose %51, [1, 0] : vector<8x8xbf16> -> vector<8x8xbf16>
    %cst_20 = arith.constant dense<0.000000e+00> : vector<8x8xf32>
    %53 = tpu.matmul %50, %52, %cst_20 {dimension_numbers = #tpu.dot_dimension_numbers<[1], [0], [0], [1], [0, 0, 1, 1], [], []>} : vector<8x8xbf16>, vector<8x8xbf16>, vector<8x8xf32> -> vector<8x8xf32>
    %54 = arith.addf %53, %4 : vector<8x8xf32>
    %cst_21 = arith.constant dense<0xFF800000> : vector<8xf32>
    %55 = vector.multi_reduction <maximumf>, %54, %cst_21 [1] : vector<8x8xf32> to vector<8xf32>
    %56 = vector.shape_cast %55 : vector<8xf32> to vector<8x1xf32>
    %57 = vector.broadcast %56 : vector<8x1xf32> to vector<8x8xf32>
    %58 = arith.subf %54, %57 : vector<8x8xf32>
    %59 = math.exp %58 : vector<8x8xf32>
    %cst_22 = arith.constant dense<0.000000e+00> : vector<8xf32>
    %60 = vector.multi_reduction <add>, %59, %cst_22 [1] : vector<8x8xf32> to vector<8xf32>
    %61 = vector.shape_cast %60 : vector<8xf32> to vector<8x1xf32>
    %62 = arith.truncf %59 : vector<8x8xf32> to vector<8x8xbf16>
    %63 = vector.extract_strided_slice %48 {offsets = [0, 0], sizes = [8, 8], strides = [1, 1]} : vector<8x32xbf16> to vector<8x8xbf16>
    %cst_23 = arith.constant dense<0.000000e+00> : vector<8x8xf32>
    %64 = tpu.matmul %62, %63, %cst_23 {dimension_numbers = #tpu.dot_dimension_numbers<[1], [0], [0], [1], [0, 0, 1, 1], [], []>} : vector<8x8xbf16>, vector<8x8xbf16>, vector<8x8xf32> -> vector<8x8xf32>
    %65 = tpu.reciprocal %61 {approx = true} : vector<8x1xf32> -> vector<8x1xf32>
    %66 = vector.broadcast %65 : vector<8x1xf32> to vector<8x8xf32>
    %67 = arith.mulf %64, %66 : vector<8x8xf32>
    %68 = arith.truncf %67 : vector<8x8xf32> to vector<8x8xbf16>
    %c0_24 = arith.constant 0 : index
    %c0_25 = arith.constant 0 : index
    %69 = vector.load %arg7[%c0_24, %c0_25] : memref<32x32xbf16, #tpu.memory_space<vmem>>, vector<8x32xbf16>
    %cst_26 = arith.constant dense<0.000000e+00> : vector<8x32xf32>
    %70 = tpu.matmul %68, %69, %cst_26 {dimension_numbers = #tpu.dot_dimension_numbers<[1], [0], [0], [1], [0, 0, 1, 1], [], []>} : vector<8x8xbf16>, vector<8x32xbf16>, vector<8x32xf32> -> vector<8x32xf32>
    %71 = arith.addf %49, %70 : vector<8x32xf32>
    %72 = vector.extract_strided_slice %44 {offsets = [0, 8], sizes = [8, 8], strides = [1, 1]} : vector<8x32xbf16> to vector<8x8xbf16>
    %73 = vector.extract_strided_slice %46 {offsets = [0, 8], sizes = [8, 8], strides = [1, 1]} : vector<8x32xbf16> to vector<8x8xbf16>
    %74 = tpu.transpose %73, [1, 0] : vector<8x8xbf16> -> vector<8x8xbf16>
    %cst_27 = arith.constant dense<0.000000e+00> : vector<8x8xf32>
    %75 = tpu.matmul %72, %74, %cst_27 {dimension_numbers = #tpu.dot_dimension_numbers<[1], [0], [0], [1], [0, 0, 1, 1], [], []>} : vector<8x8xbf16>, vector<8x8xbf16>, vector<8x8xf32> -> vector<8x8xf32>
    %76 = arith.addf %75, %4 : vector<8x8xf32>
    %cst_28 = arith.constant dense<0xFF800000> : vector<8xf32>
    %77 = vector.multi_reduction <maximumf>, %76, %cst_28 [1] : vector<8x8xf32> to vector<8xf32>
    %78 = vector.shape_cast %77 : vector<8xf32> to vector<8x1xf32>
    %79 = vector.broadcast %78 : vector<8x1xf32> to vector<8x8xf32>
    %80 = arith.subf %76, %79 : vector<8x8xf32>
    %81 = math.exp %80 : vector<8x8xf32>
    %cst_29 = arith.constant dense<0.000000e+00> : vector<8xf32>
    %82 = vector.multi_reduction <add>, %81, %cst_29 [1] : vector<8x8xf32> to vector<8xf32>
    %83 = vector.shape_cast %82 : vector<8xf32> to vector<8x1xf32>
    %84 = arith.truncf %81 : vector<8x8xf32> to vector<8x8xbf16>
    %85 = vector.extract_strided_slice %48 {offsets = [0, 8], sizes = [8, 8], strides = [1, 1]} : vector<8x32xbf16> to vector<8x8xbf16>
    %cst_30 = arith.constant dense<0.000000e+00> : vector<8x8xf32>
    %86 = tpu.matmul %84, %85, %cst_30 {dimension_numbers = #tpu.dot_dimension_numbers<[1], [0], [0], [1], [0, 0, 1, 1], [], []>} : vector<8x8xbf16>, vector<8x8xbf16>, vector<8x8xf32> -> vector<8x8xf32>
    %87 = tpu.reciprocal %83 {approx = true} : vector<8x1xf32> -> vector<8x1xf32>
    %88 = vector.broadcast %87 : vector<8x1xf32> to vector<8x8xf32>
    %89 = arith.mulf %86, %88 : vector<8x8xf32>
    %90 = arith.truncf %89 : vector<8x8xf32> to vector<8x8xbf16>
    %c8 = arith.constant 8 : index
    %c0_31 = arith.constant 0 : index
    %91 = vector.load %arg7[%c8, %c0_31] : memref<32x32xbf16, #tpu.memory_space<vmem>>, vector<8x32xbf16>
    %cst_32 = arith.constant dense<0.000000e+00> : vector<8x32xf32>
    %92 = tpu.matmul %90, %91, %cst_32 {dimension_numbers = #tpu.dot_dimension_numbers<[1], [0], [0], [1], [0, 0, 1, 1], [], []>} : vector<8x8xbf16>, vector<8x32xbf16>, vector<8x32xf32> -> vector<8x32xf32>
    %93 = arith.addf %71, %92 : vector<8x32xf32>
    %94 = vector.extract_strided_slice %44 {offsets = [0, 16], sizes = [8, 8], strides = [1, 1]} : vector<8x32xbf16> to vector<8x8xbf16>
    %95 = vector.extract_strided_slice %46 {offsets = [0, 16], sizes = [8, 8], strides = [1, 1]} : vector<8x32xbf16> to vector<8x8xbf16>
    %96 = tpu.transpose %95, [1, 0] : vector<8x8xbf16> -> vector<8x8xbf16>
    %cst_33 = arith.constant dense<0.000000e+00> : vector<8x8xf32>
    %97 = tpu.matmul %94, %96, %cst_33 {dimension_numbers = #tpu.dot_dimension_numbers<[1], [0], [0], [1], [0, 0, 1, 1], [], []>} : vector<8x8xbf16>, vector<8x8xbf16>, vector<8x8xf32> -> vector<8x8xf32>
    %98 = arith.addf %97, %4 : vector<8x8xf32>
    %cst_34 = arith.constant dense<0xFF800000> : vector<8xf32>
    %99 = vector.multi_reduction <maximumf>, %98, %cst_34 [1] : vector<8x8xf32> to vector<8xf32>
    %100 = vector.shape_cast %99 : vector<8xf32> to vector<8x1xf32>
    %101 = vector.broadcast %100 : vector<8x1xf32> to vector<8x8xf32>
    %102 = arith.subf %98, %101 : vector<8x8xf32>
    %103 = math.exp %102 : vector<8x8xf32>
    %cst_35 = arith.constant dense<0.000000e+00> : vector<8xf32>
    %104 = vector.multi_reduction <add>, %103, %cst_35 [1] : vector<8x8xf32> to vector<8xf32>
    %105 = vector.shape_cast %104 : vector<8xf32> to vector<8x1xf32>
    %106 = arith.truncf %103 : vector<8x8xf32> to vector<8x8xbf16>
    %107 = vector.extract_strided_slice %48 {offsets = [0, 16], sizes = [8, 8], strides = [1, 1]} : vector<8x32xbf16> to vector<8x8xbf16>
    %cst_36 = arith.constant dense<0.000000e+00> : vector<8x8xf32>
    %108 = tpu.matmul %106, %107, %cst_36 {dimension_numbers = #tpu.dot_dimension_numbers<[1], [0], [0], [1], [0, 0, 1, 1], [], []>} : vector<8x8xbf16>, vector<8x8xbf16>, vector<8x8xf32> -> vector<8x8xf32>
    %109 = tpu.reciprocal %105 {approx = true} : vector<8x1xf32> -> vector<8x1xf32>
    %110 = vector.broadcast %109 : vector<8x1xf32> to vector<8x8xf32>
    %111 = arith.mulf %108, %110 : vector<8x8xf32>
    %112 = arith.truncf %111 : vector<8x8xf32> to vector<8x8xbf16>
    %c16 = arith.constant 16 : index
    %c0_37 = arith.constant 0 : index
    %113 = vector.load %arg7[%c16, %c0_37] : memref<32x32xbf16, #tpu.memory_space<vmem>>, vector<8x32xbf16>
    %cst_38 = arith.constant dense<0.000000e+00> : vector<8x32xf32>
    %114 = tpu.matmul %112, %113, %cst_38 {dimension_numbers = #tpu.dot_dimension_numbers<[1], [0], [0], [1], [0, 0, 1, 1], [], []>} : vector<8x8xbf16>, vector<8x32xbf16>, vector<8x32xf32> -> vector<8x32xf32>
    %115 = arith.addf %93, %114 : vector<8x32xf32>
    %116 = vector.extract_strided_slice %44 {offsets = [0, 24], sizes = [8, 8], strides = [1, 1]} : vector<8x32xbf16> to vector<8x8xbf16>
    %117 = vector.extract_strided_slice %46 {offsets = [0, 24], sizes = [8, 8], strides = [1, 1]} : vector<8x32xbf16> to vector<8x8xbf16>
    %118 = tpu.transpose %117, [1, 0] : vector<8x8xbf16> -> vector<8x8xbf16>
    %cst_39 = arith.constant dense<0.000000e+00> : vector<8x8xf32>
    %119 = tpu.matmul %116, %118, %cst_39 {dimension_numbers = #tpu.dot_dimension_numbers<[1], [0], [0], [1], [0, 0, 1, 1], [], []>} : vector<8x8xbf16>, vector<8x8xbf16>, vector<8x8xf32> -> vector<8x8xf32>
    %120 = arith.addf %119, %4 : vector<8x8xf32>
    %cst_40 = arith.constant dense<0xFF800000> : vector<8xf32>
    %121 = vector.multi_reduction <maximumf>, %120, %cst_40 [1] : vector<8x8xf32> to vector<8xf32>
    %122 = vector.shape_cast %121 : vector<8xf32> to vector<8x1xf32>
    %123 = vector.broadcast %122 : vector<8x1xf32> to vector<8x8xf32>
    %124 = arith.subf %120, %123 : vector<8x8xf32>
    %125 = math.exp %124 : vector<8x8xf32>
    %cst_41 = arith.constant dense<0.000000e+00> : vector<8xf32>
    %126 = vector.multi_reduction <add>, %125, %cst_41 [1] : vector<8x8xf32> to vector<8xf32>
    %127 = vector.shape_cast %126 : vector<8xf32> to vector<8x1xf32>
    %128 = arith.truncf %125 : vector<8x8xf32> to vector<8x8xbf16>
    %129 = vector.extract_strided_slice %48 {offsets = [0, 24], sizes = [8, 8], strides = [1, 1]} : vector<8x32xbf16> to vector<8x8xbf16>
    %cst_42 = arith.constant dense<0.000000e+00> : vector<8x8xf32>
    %130 = tpu.matmul %128, %129, %cst_42 {dimension_numbers = #tpu.dot_dimension_numbers<[1], [0], [0], [1], [0, 0, 1, 1], [], []>} : vector<8x8xbf16>, vector<8x8xbf16>, vector<8x8xf32> -> vector<8x8xf32>
    %131 = tpu.reciprocal %127 {approx = true} : vector<8x1xf32> -> vector<8x1xf32>
    %132 = vector.broadcast %131 : vector<8x1xf32> to vector<8x8xf32>
    %133 = arith.mulf %130, %132 : vector<8x8xf32>
    %134 = arith.truncf %133 : vector<8x8xf32> to vector<8x8xbf16>
    %c24 = arith.constant 24 : index
    %c0_43 = arith.constant 0 : index
    %135 = vector.load %arg7[%c24, %c0_43] : memref<32x32xbf16, #tpu.memory_space<vmem>>, vector<8x32xbf16>
    %cst_44 = arith.constant dense<0.000000e+00> : vector<8x32xf32>
    %136 = tpu.matmul %134, %135, %cst_44 {dimension_numbers = #tpu.dot_dimension_numbers<[1], [0], [0], [1], [0, 0, 1, 1], [], []>} : vector<8x8xbf16>, vector<8x32xbf16>, vector<8x32xf32> -> vector<8x32xf32>
    %137 = arith.addf %115, %136 : vector<8x32xf32>
    %138 = arith.addf %1, %137 : vector<8x32xf32>
    %c0_45 = arith.constant 0 : index
    %c0_46 = arith.constant 0 : index
    %139 = vector.load %arg8[%c0_45, %c0_46] : memref<1x32xf32, #tpu.memory_space<vmem>>, vector<1x32xf32>
    %140 = vector.shape_cast %139 : vector<1x32xf32> to vector<32xf32>
    %141 = vector.shape_cast %140 : vector<32xf32> to vector<1x32xf32>
    %142 = vector.broadcast %141 : vector<1x32xf32> to vector<8x32xf32>
    %143 = arith.addf %138, %142 : vector<8x32xf32>
    %c0_47 = arith.constant 0 : index
    %c0_48 = arith.constant 0 : index
    %144 = vector.load %arg9[%c0_47, %c0_48] : memref<1x32xf32, #tpu.memory_space<vmem>>, vector<1x32xf32>
    %145 = vector.shape_cast %144 : vector<1x32xf32> to vector<32xf32>
    %c0_49 = arith.constant 0 : index
    %c0_50 = arith.constant 0 : index
    %146 = vector.load %arg10[%c0_49, %c0_50] : memref<1x32xf32, #tpu.memory_space<vmem>>, vector<1x32xf32>
    %147 = vector.shape_cast %146 : vector<1x32xf32> to vector<32xf32>
    %cst_51 = arith.constant dense<0.000000e+00> : vector<8xf32>
    %148 = vector.multi_reduction <add>, %143, %cst_51 [1] : vector<8x32xf32> to vector<8xf32>
    %149 = vector.shape_cast %148 : vector<8xf32> to vector<8x1xf32>
    %cst_52 = arith.constant 3.200000e+01 : f32
    %150 = vector.broadcast %cst_52 : f32 to vector<8x1xf32>
    %151 = arith.divf %149, %150 : vector<8x1xf32>
    %152 = vector.broadcast %151 : vector<8x1xf32> to vector<8x32xf32>
    %153 = arith.subf %143, %152 : vector<8x32xf32>
    %154 = arith.mulf %153, %153 : vector<8x32xf32>
    %cst_53 = arith.constant dense<0.000000e+00> : vector<8xf32>
    %155 = vector.multi_reduction <add>, %154, %cst_53 [1] : vector<8x32xf32> to vector<8xf32>
    %156 = vector.shape_cast %155 : vector<8xf32> to vector<8x1xf32>
    %cst_54 = arith.constant 3.100000e+01 : f32
    %157 = vector.broadcast %cst_54 : f32 to vector<8x1xf32>
    %158 = arith.divf %156, %157 : vector<8x1xf32>
    %159 = math.sqrt %158 : vector<8x1xf32>
    %160 = vector.broadcast %149 : vector<8x1xf32> to vector<8x32xf32>
    %161 = arith.subf %143, %160 : vector<8x32xf32>
    %162 = vector.shape_cast %145 : vector<32xf32> to vector<1x32xf32>
    %163 = vector.broadcast %162 : vector<1x32xf32> to vector<8x32xf32>
    %164 = arith.mulf %163, %161 : vector<8x32xf32>
    %cst_55 = arith.constant 9.99999997E-7 : f32
    %165 = vector.broadcast %cst_55 : f32 to vector<8x1xf32>
    %166 = arith.addf %159, %165 : vector<8x1xf32>
    %167 = vector.broadcast %166 : vector<8x1xf32> to vector<8x32xf32>
    %168 = arith.divf %164, %167 : vector<8x32xf32>
    %169 = vector.shape_cast %147 : vector<32xf32> to vector<1x32xf32>
    %170 = vector.broadcast %169 : vector<1x32xf32> to vector<8x32xf32>
    %171 = arith.addf %168, %170 : vector<8x32xf32>
    %172 = arith.truncf %171 : vector<8x32xf32> to vector<8x32xbf16>
    %cst_56 = arith.constant 0.000000e+00 : f32
    %173 = vector.broadcast %cst_56 : f32 to vector<8x32xf32>
    %c0_57 = arith.constant 0 : index
    %c0_58 = arith.constant 0 : index
    %174 = vector.load %arg11[%c0_57, %c0_58] : memref<32x64xbf16, #tpu.memory_space<vmem>>, vector<32x64xbf16>
    %cst_59 = arith.constant dense<0.000000e+00> : vector<8x64xf32>
    %175 = tpu.matmul %172, %174, %cst_59 {dimension_numbers = #tpu.dot_dimension_numbers<[1], [0], [0], [1], [0, 0, 1, 1], [], []>} : vector<8x32xbf16>, vector<32x64xbf16>, vector<8x64xf32> -> vector<8x64xf32>
    %c0_60 = arith.constant 0 : index
    %c0_61 = arith.constant 0 : index
    %176 = vector.load %arg12[%c0_60, %c0_61] : memref<1x64xf32, #tpu.memory_space<vmem>>, vector<1x64xf32>
    %177 = vector.shape_cast %176 : vector<1x64xf32> to vector<64xf32>
    %178 = vector.shape_cast %177 : vector<64xf32> to vector<1x64xf32>
    %179 = vector.broadcast %178 : vector<1x64xf32> to vector<8x64xf32>
    %180 = arith.addf %175, %179 : vector<8x64xf32>
    %cst_62 = arith.constant 0.000000e+00 : f32
    %181 = vector.broadcast %cst_62 : f32 to vector<8x64xf32>
    %182 = arith.maximumf %180, %181 : vector<8x64xf32>
    %183 = arith.truncf %182 : vector<8x64xf32> to vector<8x64xbf16>
    %c0_63 = arith.constant 0 : index
    %c0_64 = arith.constant 0 : index
    %184 = vector.load %arg13[%c0_63, %c0_64] : memref<64x32xbf16, #tpu.memory_space<vmem>>, vector<64x32xbf16>
    %cst_65 = arith.constant dense<0.000000e+00> : vector<8x32xf32>
    %185 = tpu.matmul %183, %184, %cst_65 {dimension_numbers = #tpu.dot_dimension_numbers<[1], [0], [0], [1], [0, 0, 1, 1], [], []>} : vector<8x64xbf16>, vector<64x32xbf16>, vector<8x32xf32> -> vector<8x32xf32>
    %186 = arith.addf %173, %185 : vector<8x32xf32>
    %187 = arith.addf %143, %186 : vector<8x32xf32>
    %c0_66 = arith.constant 0 : index
    %c0_67 = arith.constant 0 : index
    %188 = vector.load %arg14[%c0_66, %c0_67] : memref<1x32xf32, #tpu.memory_space<vmem>>, vector<1x32xf32>
    %189 = vector.shape_cast %188 : vector<1x32xf32> to vector<32xf32>
    %190 = vector.shape_cast %189 : vector<32xf32> to vector<1x32xf32>
    %191 = vector.broadcast %190 : vector<1x32xf32> to vector<8x32xf32>
    %192 = arith.addf %187, %191 : vector<8x32xf32>
    %c0_68 = arith.constant 0 : index
    %c0_69 = arith.constant 0 : index
    %c0_70 = arith.constant 0 : index
    %193 = vector.load %arg15[%c0_68, %c0_69, %c0_70] : memref<1x8x32xf32, #tpu.memory_space<vmem>>, vector<1x8x32xf32>
    %194 = vector.shape_cast %193 : vector<1x8x32xf32> to vector<8x32xf32>
    %195 = vector.shape_cast %192 : vector<8x32xf32> to vector<1x8x32xf32>
    tpu.vector_store %arg15[%c0_68, %c0_69, %c0_70], %195 {strides = array<i32>} : memref<1x8x32xf32, #tpu.memory_space<vmem>>, vector<1x8x32xf32>,
    return
  }
  func.func @transform_0(%arg0: i32) -> (i32, i32, i32) {
    %c0_i32 = arith.constant 0 : i32
    %c0_i32_0 = arith.constant 0 : i32
    %c0_i32_1 = arith.constant 0 : i32
    return %arg0, %c0_i32, %c0_i32_0 : i32, i32, i32
  }
  func.func @transform_1(%arg0: i32) -> (i32, i32, i32) {
    %c0_i32 = arith.constant 0 : i32
    %c0_i32_0 = arith.constant 0 : i32
    %c0_i32_1 = arith.constant 0 : i32
    return %arg0, %c0_i32, %c0_i32_0 : i32, i32, i32
  }
  func.func @transform_2(%arg0: i32) -> (i32, i32) {
    %c0_i32 = arith.constant 0 : i32
    %c0_i32_0 = arith.constant 0 : i32
    %c0_i32_1 = arith.constant 0 : i32
    return %c0_i32, %c0_i32_0 : i32, i32
  }
  func.func @transform_3(%arg0: i32) -> (i32, i32) {
    %c0_i32 = arith.constant 0 : i32
    %c0_i32_0 = arith.constant 0 : i32
    %c0_i32_1 = arith.constant 0 : i32
    return %c0_i32, %c0_i32_0 : i32, i32
  }
  func.func @transform_4(%arg0: i32) -> (i32, i32) {
    %c0_i32 = arith.constant 0 : i32
    %c0_i32_0 = arith.constant 0 : i32
    %c0_i32_1 = arith.constant 0 : i32
    return %c0_i32, %c0_i32_0 : i32, i32
  }
  func.func @transform_5(%arg0: i32) -> (i32, i32) {
    %c0_i32 = arith.constant 0 : i32
    %c0_i32_0 = arith.constant 0 : i32
    %c0_i32_1 = arith.constant 0 : i32
    return %c0_i32, %c0_i32_0 : i32, i32
  }
  func.func @transform_6(%arg0: i32) -> (i32, i32) {
    %c0_i32 = arith.constant 0 : i32
    %c0_i32_0 = arith.constant 0 : i32
    %c0_i32_1 = arith.constant 0 : i32
    return %c0_i32, %c0_i32_0 : i32, i32
  }
  func.func @transform_7(%arg0: i32) -> (i32, i32) {
    %c0_i32 = arith.constant 0 : i32
    %c0_i32_0 = arith.constant 0 : i32
    %c0_i32_1 = arith.constant 0 : i32
    return %c0_i32, %c0_i32_0 : i32, i32
  }
  func.func @transform_8(%arg0: i32) -> (i32, i32) {
    %c0_i32 = arith.constant 0 : i32
    %c0_i32_0 = arith.constant 0 : i32
    %c0_i32_1 = arith.constant 0 : i32
    return %c0_i32, %c0_i32_0 : i32, i32
  }
  func.func @transform_9(%arg0: i32) -> (i32, i32) {
    %c0_i32 = arith.constant 0 : i32
    %c0_i32_0 = arith.constant 0 : i32
    %c0_i32_1 = arith.constant 0 : i32
    return %c0_i32, %c0_i32_0 : i32, i32
  }
  func.func @transform_10(%arg0: i32) -> (i32, i32) {
    %c0_i32 = arith.constant 0 : i32
    %c0_i32_0 = arith.constant 0 : i32
    %c0_i32_1 = arith.constant 0 : i32
    return %c0_i32, %c0_i32_0 : i32, i32
  }
  func.func @transform_11(%arg0: i32) -> (i32, i32) {
    %c0_i32 = arith.constant 0 : i32
    %c0_i32_0 = arith.constant 0 : i32
    %c0_i32_1 = arith.constant 0 : i32
    return %c0_i32, %c0_i32_0 : i32, i32
  }
  func.func @transform_12(%arg0: i32) -> (i32, i32) {
    %c0_i32 = arith.constant 0 : i32
    %c0_i32_0 = arith.constant 0 : i32
    %c0_i32_1 = arith.constant 0 : i32
    return %c0_i32, %c0_i32_0 : i32, i32
  }
  func.func @transform_13(%arg0: i32) -> (i32, i32) {
    %c0_i32 = arith.constant 0 : i32
    %c0_i32_0 = arith.constant 0 : i32
    %c0_i32_1 = arith.constant 0 : i32
    return %c0_i32, %c0_i32_0 : i32, i32
  }
  func.func @transform_14(%arg0: i32) -> (i32, i32, i32) {
    %c0_i32 = arith.constant 0 : i32
    %c0_i32_0 = arith.constant 0 : i32
    %c0_i32_1 = arith.constant 0 : i32
    return %arg0, %c0_i32, %c0_i32_0 : i32, i32, i32
  }
}

</mosaic_0001>

<bundles_post_ra>
// kernel: tpu_custom_call.1
= control target key start
LH: loop header
LB: loop body
LE: loop exit
PB: predicated region body
PF: predicated region fallthrough
CT: control target
= control target key end

     0   :  { %s2729_s0 = inlined_call_operand.vmem [shape: f32[2,8,32], index: 0, kind: input, shape index: {}]   ;;  %s2730_s1 = inlined_call_operand.hbm [shape: bf16[2,8,8], index: 1, kind: input, shape index: {}]   ;;  %s2731_s2 = inlined_call_operand.vmem [shape: f32[1,32], index: 2, kind: input, shape index: {}]   ;;  %s2732_s3 = inlined_call_operand.vmem [shape: f32[1,32], index: 3, kind: input, shape index: {}]   ;;  %s2733_s4 = inlined_call_operand.vmem [shape: bf16[32,96], index: 4, kind: input, shape index: {}]   ;;  %s2734_s5 = inlined_call_operand.hbm [shape: f32[1,96], index: 5, kind: input, shape index: {}]   ;;  %s2735_s6 = inlined_call_operand.vmem [shape: bf16[32,32], index: 6, kind: input, shape index: {}]   ;;  %s2736_s7 = inlined_call_operand.hbm [shape: f32[1,32], index: 7, kind: input, shape index: {}]   ;;  %s2737_s8 = inlined_call_operand.hbm [shape: f32[1,32], index: 8, kind: input, shape index: {}]   ;;  %s2738_s9 = inlined_call_operand.hbm [shape: f32[1,32], index: 9, kind: input, shape index: {}]   ;;  %s2739_s10 = inlined_call_operand.vmem [shape: bf16[32,64], index: 10, kind: input, shape index: {}]   ;;  %s2740_s11 = inlined_call_operand.vmem [shape: f32[1,64], index: 11, kind: input, shape index: {}]   ;;  %s2741_s12 = inlined_call_operand.vmem [shape: bf16[64,32], index: 12, kind: input, shape index: {}]   ;;  %s2742_s13 = inlined_call_operand.vmem [shape: f32[1,32], index: 13, kind: input, shape index: {}]   ;;  %s2743_s14 = inlined_call_operand.hbm [shape: f32[2,8,32], index: 14, kind: output, shape index: {}]  }
   0x1   :  { %2750 = sst [smem:[#allocation16_spill]] %s2734_s5 }
   0x2   :  { %2751 = sst [smem:[#allocation17_spill]] %s2736_s7 }
   0x3   :  { %2752 = sst [smem:[#allocation18_spill]] %s2739_s10 }
   0x4   :  { %2753 = sst [smem:[#allocation19_spill]] %s2740_s11 }
   0x5   :  { %2754 = sst [smem:[#allocation20_spill]] %s2741_s12 }
   0x6   :  { %2755 = sst [smem:[#allocation21_spill]] %s2742_s13 }
   0x7   :  { %2756 = sst [smem:[#allocation22_spill]] %s2743_s14 }
   0x8   :  { %19 = vsyncpa [#allocation3], 0 }
   0x9   :  { %21 = vsyncpa [#allocation3 + $0x1], 0 }
   0xa   :  { %22 = vsyncpa [#allocation6], 0 }
   0xb   :  { %23 = vsyncpa [#allocation9], 0 }
   0xc   :  { %24 = vsyncpa [#allocation4], 0 }
   0xd   :  { %26 = vsyncpa [#allocation4 + $0x1], 0  ;;  %s2266_s29 = smov 0   ;;  %s2268_s30 = smov 0  }
   0xe   :  { %s2270_s15 = smov 0   ;;  %s2272_s16 = smov 0  }
   0xf LB: > { %s2172_s17 = smov [#allocation5]   ;;  %s2287_s19 = sadd.s32 4294967295, %s2170_s16   ;;  %s2170_s16 = sphi %s2272_s16, %s2784_s16   ;;  %s2166_s15 = sphi %s2270_s15, %s2783_s15   ;;  %s2162_s30 = sphi %s2268_s30, %s2782_s30   ;;  %s2158_s29 = sphi %s2266_s29, %s2781_s29  }
  0x10   : > { %s389_s18 = sshll.u32 %s2172_s17, 4  ;;  %p1636_p0 = scmp.ge.s32.totalorder %s2170_s16, 1  ;;  %s2292_s18 = int_to_ptr.vmem [resolvable:$true] %s389_s18 }
  0x11   : > { %p2747_p1 = scmp.eq.s32.totalorder %s2287_s19, 0  ;;  %p367_p2 = scmp.lt.s32.totalorder %s2170_s16, 3 }
  0x12   : > { %s2173_s21 = smov [#allocation8]   ;;  %s2174_s23 = smov [#allocation7]  }
  0x13   : > { %p2294_p3 = pnand %p1636_p0, %p367_p2  ;;  %s414_s22 = sshll.u32 %s2173_s21, 4  ;;  %s2301_s22 = int_to_ptr.vmem [resolvable:$true] %s414_s22 }
  0x14   : > { %s403_s24 = sshll.u32 %s2174_s23, 4  ;;  %s2175_s26 = smov [#allocation10]   ;;  %s2309_s24 = int_to_ptr.vmem [resolvable:$true] %s403_s24 }
  0x15   : > { %s2757_s20 = scalar_select %p2294_p3, 1, 0 }
  0x16   : > { %p1842_p5 = pneg %p2294_p3  ;;  %s2311_s27 = sshll.u32 %s2175_s26, 4  ;;  %s426_s27 = int_to_ptr.vmem [resolvable:$true] %s2311_s27 }
  0x17   : > { %s2759_s5 = sld [smem:[#allocation16_spill]] }
  0x18   : > { %p2305_p6 = pnand %p1842_p5, %p2747_p1 }
  0x1a   : > { %p2321_p8 = pneg %p2305_p6 }
  0x1d   : > { %s1954_s14 = scalar_lea.hbm %s2759_s5, 16 }
  0x1e   : > { %p1955_p7 = scmp.ne.s32.totalorder %s2759_s5, %s1954_s14  ;;  %p1961_p11 = scmp.lt.u32.totalorder %s1954_s14, %s2759_s5 }
  0x20   : > { %p1957_p9 = pnand %p2321_p8, %p1955_p7 }
  0x22   : > { %p1958_p10 = pneg %p1957_p9 }
  0x24   : > { %p1963_p12 = pnand %p1961_p11, %p1958_p10 }
  0x26   : > { %1966 = shalt.err (!%p1963_p12)
}
  0x27   : > { %s1967_s13 = scalar_lea.vmem %s2292_s18, 16  ;;  %s1974_s28 = scalar_lea.vmem %s2292_s18, 32 }
  0x28   : > { %p1968_p13 = scmp.ne.s32.totalorder %s2292_s18, %s1967_s13  ;;  %p1975_p5 = scmp.lt.s32.totalorder %s2292_s18, %s2292_s18 }
  0x29   : > { %p1976_p7 = scmp.lt.s32.totalorder %s1974_s28, %s1967_s13 }
  0x2a   : > { %p1970_p0 = pnand %p1968_p13, %p2321_p8 }
  0x2b   : > { %p1977_p9 = por %p1976_p7, %p1975_p5 }
  0x2c   : > { %p1971_p2 = pneg %p1970_p0 }
  0x2e   : > { %p1978_p4 = pnand %p1977_p9, %p1971_p2 }
  0x30   : > { %1981 = shalt.err (!%p1978_p4)
}
  0x31   : > { %1845 = dma.hbm_to_vmem [thread:$0]  (!%p2305_p6), %s2759_s5, 16, %s2292_s18, [#allocation6]  }
  0x32   : > { %s1982_s26 = scalar_lea.hbm %s2737_s8, 16 }
  0x33   : > { %p1983_p10 = scmp.ne.s32.totalorder %s2737_s8, %s1982_s26  ;;  %p1989_p4 = scmp.lt.u32.totalorder %s1982_s26, %s2737_s8 }
  0x35   : > { %p1985_p11 = pnand %p1983_p10, %p2321_p8 }
  0x37   : > { %p1986_p12 = pneg %p1985_p11 }
  0x39   : > { %p1991_p13 = pnand %p1989_p4, %p1986_p12 }
  0x3b   : > { %1994 = shalt.err (!%p1991_p13)
}
  0x3c   : > { %s1995_s18 = scalar_lea.vmem %s2301_s22, 16  ;;  %s2002_s10 = scalar_lea.vmem %s2301_s22, 32 }
  0x3d   : > { %p1996_p0 = scmp.ne.s32.totalorder %s2301_s22, %s1995_s18  ;;  %p2003_p7 = scmp.lt.s32.totalorder %s2301_s22, %s2301_s22 }
  0x3e   : > { %p2004_p9 = scmp.lt.s32.totalorder %s2002_s10, %s1995_s18 }
  0x3f   : > { %p1998_p2 = pnand %p1996_p0, %p2321_p8 }
  0x40   : > { %p2005_p10 = por %p2004_p9, %p2003_p7 }
  0x41   : > { %p1999_p5 = pneg %p1998_p2 }
  0x43   : > { %p2006_p11 = pnand %p2005_p10, %p1999_p5 }
  0x45   : > { %2009 = shalt.err (!%p2006_p11)
}
  0x46   : > { %1851 = dma.hbm_to_vmem [thread:$0]  (!%p2305_p6), %s2737_s8, 16, %s2301_s22, [#allocation9]  }
  0x47   : > { %s2761_s7 = sld [smem:[#allocation17_spill]] }
  0x4d   : > { %s2010_s21 = scalar_lea.hbm %s2761_s7, 16 }
  0x4e   : > { %p2011_p12 = scmp.ne.s32.totalorder %s2761_s7, %s2010_s21  ;;  %p2017_p0 = scmp.lt.u32.totalorder %s2010_s21, %s2761_s7 }
  0x50   : > { %p2013_p4 = pnand %p2011_p12, %p2321_p8 }
  0x52   : > { %p2014_p13 = pneg %p2013_p4 }
  0x54   : > { %p2019_p2 = pnand %p2017_p0, %p2014_p13 }
  0x56   : > { %2022 = shalt.err (!%p2019_p2)
}
  0x57   : > { %s2023_s22 = scalar_lea.vmem %s2309_s24, 16  ;;  %s2030_s10 = scalar_lea.vmem %s2309_s24, 32 }
  0x58   : > { %p2024_p5 = scmp.ne.s32.totalorder %s2309_s24, %s2023_s22  ;;  %p2031_p10 = scmp.lt.s32.totalorder %s2309_s24, %s2309_s24 }
  0x59   : > { %p2032_p11 = scmp.lt.s32.totalorder %s2030_s10, %s2023_s22 }
  0x5a   : > { %p2026_p7 = pnand %p2024_p5, %p2321_p8 }
  0x5b   : > { %p2033_p12 = por %p2032_p11, %p2031_p10 }
  0x5c   : > { %p2027_p9 = pneg %p2026_p7 }
  0x5e   : > { %p2034_p4 = pnand %p2033_p12, %p2027_p9 }
  0x60   : > { %2037 = shalt.err (!%p2034_p4)
}
  0x61   : > { %1848 = dma.hbm_to_vmem [thread:$0]  (!%p2305_p6), %s2761_s7, 16, %s2309_s24, [#allocation6]  }
  0x62   : > { %s2038_s21 = scalar_lea.hbm %s2738_s9, 16 }
  0x63   : > { %p2039_p13 = scmp.ne.s32.totalorder %s2738_s9, %s2038_s21  ;;  %p2045_p5 = scmp.lt.u32.totalorder %s2038_s21, %s2738_s9 }
  0x65   : > { %p2041_p0 = pnand %p2039_p13, %p2321_p8 }
  0x67   : > { %p2042_p2 = pneg %p2041_p0 }
  0x69   : > { %p2047_p7 = pnand %p2045_p5, %p2042_p2 }
  0x6b   : > { %2050 = shalt.err (!%p2047_p7)
}
  0x6c   : > { %s2051_s22 = scalar_lea.vmem %s426_s27, 16  ;;  %s2058_s24 = scalar_lea.vmem %s426_s27, 32 }
  0x6d   : > { %p2052_p9 = scmp.ne.s32.totalorder %s426_s27, %s2051_s22  ;;  %p2059_p12 = scmp.lt.s32.totalorder %s426_s27, %s426_s27 }
  0x6e   : > { %p2060_p4 = scmp.lt.s32.totalorder %s2058_s24, %s2051_s22 }
  0x6f   : > { %p2054_p10 = pnand %p2052_p9, %p2321_p8 }
  0x70   : > { %p2061_p1 = por %p2060_p4, %p2059_p12 }
  0x71   : > { %p2055_p11 = pneg %p2054_p10 }
  0x73   : > { %p2062_p3 = pnand %p2061_p1, %p2055_p11 }
  0x75   : > { %2065 = shalt.err (!%p2062_p3)
}
  0x76   : > { %1854 = dma.hbm_to_vmem [thread:$0]  (!%p2305_p6), %s2738_s9, 16, %s426_s27, [#allocation9]  }
  0x77   : > { %s1635_s23 = sadd.s32 4294967294, %s2170_s16   ;;  %s2412_s25 = sadd.s32 1, %s2170_s16  }
  0x78   : > { %s62_s11 = ssub.s32 %s2170_s16, %s2412_s25  ;;  %s65_s14 = sadd.s32 1, %s2166_s15 }
  0x79   : > { %p63_p1 = scmp.eq.s32.totalorder %s62_s11, 0  ;;  %p72_p3 = scmp.ne.s32.totalorder %s2166_s15, %s2162_s30 }
  0x7a   : > { %p73_p8 = scmp.eq.s32.totalorder %s2170_s16, 0  ;;  %p78_p13 = scmp.ne.s32.totalorder %s2162_s30, %s2158_s29 }
  0x7b   : > { %s2423_s17 = scalar_select %p63_p1, %s2166_s15, %s65_s14  }
  0x7c   : > { %p2425_p0 = por %p73_p8, %p72_p3  ;;  %p2763_p2 = scmp.eq.s32.totalorder %s2287_s19, 0 }
  0x7d   : > { %p354_p5 = scmp.eq.s32.totalorder %s2287_s19, 1  ;;  %p360_p7 = scmp.eq.s32.totalorder %s1635_s23, 1 }
  0x7e   : > { %p2431_p6 = por %p2763_p2, %p78_p13  ;;  %p1867_p9 = scmp.lt.s32.totalorder %s2170_s16, 2 }
  0x7f   : > { %s455_s26 = sand.u32 1, %s2166_s15   ;;  %p2438_p10 = por %p354_p5, %p72_p3 }
  0x80   : > { %p2442_p11 = por %p360_p7, %p78_p13  ;;  %s1642_s18 = sshll.u32 %s455_s26, 2 }
  0x81   : > { %s2765_s13 = scalar_select %p2438_p10, 1, 0 }
  0x82   : > { %s2766_s28 = scalar_select %p2442_p11, 1, 0 }
  0x83   : > { %s1643_s22 = sshll.u32 %s2170_s16, 6  ;;  %s459_s23 = scalar_lea.vmem [#allocation2], %s1642_s18 }
  0x84   : > { %s2450_s12 = scalar_lea.hbm %s2730_s1, %s1643_s22  ;;  %s466_s11 = sshll.u32 %s459_s23, 4  ;;  %s2452_s11 = int_to_ptr.vmem [resolvable:$true] %s466_s11 }
  0x85   : > { %p2456_p12 = pnand %p1867_p9, %p2425_p0  ;;  %s456_s5 = scalar_lea.sflag [#allocation3], %s455_s26 }
  0x86   : > { %s2066_s7 = scalar_lea.hbm %s2450_s12, 64  ;;  %s2071_s24 = scalar_lea.hbm %s2730_s1, 128 }
  0x87   : > { %p2067_p4 = scmp.ne.s32.totalorder %s2450_s12, %s2066_s7  ;;  %p2068_p1 = pneg %p2456_p12 }
  0x88   : > { %p2072_p13 = scmp.lt.u32.totalorder %s2450_s12, %s2730_s1  ;;  %p2073_p0 = scmp.lt.u32.totalorder %s2071_s24, %s2066_s7 }
  0x89   : > { %p2069_p3 = pnand %p2068_p1, %p2067_p4  ;;  %p2075_p5 = scmp.lt.u32.totalorder %s2066_s7, %s2450_s12 }
  0x8a   : > { %p2074_p2 = por %p2073_p0, %p2072_p13 }
  0x8b   : > { %p2070_p8 = pneg %p2069_p3 }
  0x8c   : > { %p2076_p7 = por %p2075_p5, %p2074_p2 }
  0x8e   : > { %p2077_p9 = pnand %p2076_p7, %p2070_p8 }
  0x90   : > { %2080 = shalt.err (!%p2077_p9)
}
  0x91   : > { %s2081_s26 = scalar_lea.vmem %s2452_s11, 64  ;;  %s2176_s23 = smov [#allocation2]  }
  0x92   : > { %p2082_p4 = scmp.ne.s32.totalorder %s2452_s11, %s2081_s26  ;;  %s2086_s18 = sshll.u32 %s2176_s23, 4  ;;  %s2087_s18 = int_to_ptr.vmem [resolvable:$false] %s2086_s18 }
  0x93   : > { %s2088_s22 = scalar_lea.vmem %s2087_s18, 128  ;;  %p2089_p10 = scmp.lt.s32.totalorder %s2452_s11, %s2087_s18 }
  0x94   : > { %p2084_p3 = pnand %p2082_p4, %p2068_p1  ;;  %p2090_p13 = scmp.lt.s32.totalorder %s2088_s22, %s2081_s26 }
  0x96   : > { %p2085_p11 = pneg %p2084_p3  ;;  %p2091_p0 = por %p2090_p13, %p2089_p10 }
  0x98   : > { %p2092_p2 = pnand %p2091_p0, %p2085_p11 }
  0x9a   : > { %2095 = shalt.err (!%p2092_p2)
}
  0x9b   : > { %1858 = dma.hbm_to_vmem [thread:$0]  (!%p2456_p12), %s2450_s12, 64, %s2452_s11, %s456_s5  }
  0x9c   : > { %p2768_p8 = scmp.ne.s32.totalorder %s2757_s20, 0 }
  0x9d   : > { %s2488_s7 = sand.u32 (!%p2768_p8), 1, %s2162_s30  }
  0x9e   : > { %475 = sbr.rel (%p2768_p8) target bundleno = 3418 (0xd5a), region = 76  ;;  %s1645_s24 = sshll.u32 (!%p2768_p8), %s2488_s7, 2 }
  0x9f   : > { %s478_s21 = scalar_lea.sflag (!%p2768_p8), [#allocation3], %s2488_s7  ;;  %s2492_s10 = scalar_lea.vmem (!%p2768_p8), [#allocation2], %s1645_s24 }
  0xa5   : > { %2141 = dma.done.wait (%p2431_p6), %s478_s21, 64  }
  0xa6   : > { %2143 = vsyncadd (%p2431_p6), %s478_s21, 4294967232  ;;  %p2769_p10 = scmp.eq.s32.totalorder %s2287_s19, 0 }
  0xa8   : > { %2145 = dma.done.wait (%p2769_p10), [#allocation6], 32   ;;  %p2770_p11 = pmov %p2769_p10 }
  0xa9   : > { %p2771_p12 = pmov %p2769_p10 }
  0xaa   : > { %2147 = vsyncadd (%p2770_p11), [#allocation6], 4294967264 }
  0xab   : > { %2149 = dma.done.wait (%p2771_p12), [#allocation9], 32   ;;  %p2772_p1 = pmov %p2769_p10 }
  0xac   : > { %p546_p5 = scmp.lt.s32.totalorder %s2287_s19, 1  ;;  %vm556_vm0 = vcmask 261120   ;;  %v1922_v7 = vld [vmem:[%s2733_s4] sm:$0xff]   ;;  %v2177_v8 = vmov 0.0   ;;  %vm2178_vm1 = vmmov 0   ;;  %v1923_v9 = vld [vmem:[%s2733_s4 + $0x8] sm:$0xff]  }
  0xad   : > { %2151 = vsyncadd (%p2772_p1), [#allocation9], 4294967264  ;;  %1722 = vmatprep.subr.bf16.mxu1 %v2177_v8  ;;  %1726 = vmatprep.mubr.msk.bf16.mxu1 %vm2178_vm1, %v2177_v8  ;;  %v1652_v19 = vld [vmem:[%s2731_s2] ss:$0 sm:$0xff]  ;;  %v1654_v26 = vld [vmem:[#allocation5] ss:$0 sm:$0xff] }
  0xae   : > { %s547_s5 = scalar_select %p546_p5, %s2287_s19, 1  ;;  %1723 = vmatpush3.bf16.msra.mxu1 %v1922_v7  ;;  %1736 = vmatprep.subr.bf16.mxu0 %v2177_v8  ;;  %v1653_v22 = vld [vmem:[%s2732_s3] ss:$0 sm:$0xff]  ;;  %vm667_vm4 = vcmask 64512   ;;  %vm729_vm5 = vcmask 1043456   ;;  %vm1447_vm8 = vcmask 523264  }
  0xaf   : > { %1724 = vmatprep.subr.bf16.mxu1 %v2177_v8  ;;  %1738 = vmatprep.mubr.msk.bf16.mxu0 %vm2178_vm1, %v2177_v8  ;;  %s2180_s12 = smov 120   ;;  %s2181_s27 = smov 88   ;;  %v552_v40 = vld [vmem:[%s2492_s10] sm:$0xf] }
  0xb0   : > { %s1651_s20 = sshll.u32 %s547_s5, 3  ;;  %v2560_v41 = vunpack.c.l.bf16 %v552_v40  ;;  %s2182_s10 = smov 64   ;;  %v776_v7 = vld [vmem:[%s2735_s6] sm:$0xf] }
  0xb1   : > { %s549_s11 = scalar_lea.vmem %s2729_s0, %s1651_s20  ;;  %s2179_s20 = smov 96  }
  0xb2   : > { %v2511_v0 = vld [vmem:[%s549_s11] sm:$0xff]  ;;  %1725 = vmatpush3.bf16.msra.mxu1 %v1923_v9  ;;  %s2183_s11 = smov 56   ;;  %s2184_s14 = smov 80   ;;  %v940_v9 = vsel %vm729_vm5, %v776_v7, 0 }
  0xb3   : > { %v557_v1 = vsel %vm556_vm0, %v2511_v0, 0.0  ;;  %1730 = vmatprep.subr.bf16.mxu1 %v2177_v8  ;;  %s2185_s26 = smov 112   ;;  %s2186_s23 = smov 104  }
  0xb4   : > { %558 = vadd.xlane.f32.xlu0 %v557_v1  ;;  %s2187_s18 = smov 48   ;;  %s2775_s24 = sld [smem:[#allocation19_spill]] }
  0xb5   : > { %s1650_s21 = sshll.u32 %s2488_s7, 3  ;;  %s2777_s22 = sld [smem:[#allocation22_spill]] }
  0xb6   : > { %p2778_p7 = scmp.ne.s32.totalorder %s2765_s13, 0  ;;  %s2190_s5 = smov [#allocation11]  }
 0x141   : > { %v559_v2 = vpop.xlane.xlu0 %558 }
 0x142   : > { %v561_v3 = vmul.f32 0.03125, %v559_v2  ;;  %v576_v18 = vsub.f32 %v2511_v0, %v559_v2 }
 0x144   : > { %v562_v4 = vsub.f32 %v2511_v0, %v561_v3  ;;  %v583_v20 = vmul.f32 %v1652_v19, %v576_v18 }
 0x146   : > { %v563_v5 = vmul.f32 %v562_v4, %v562_v4 }
 0x148   : > { %v564_v6 = vsel %vm556_vm0, %v563_v5, 0.0 }
 0x149   : > { %565 = vadd.xlane.f32.xlu0 %v564_v6 }
 0x1d6   : > { %v566_v10 = vpop.xlane.xlu0 %565 }
 0x1d7   : > { %v568_v11 = vmul.f32 0.032258064, %v566_v10  ;;  %v889_v10 = vld [vmem:[%s2735_s6 + $0x4] sm:$0xf] }
 0x1d9   : > { %1930 = vrsqrt.f32 %v568_v11  ;;  %vm571_vm2 = vcmp.eq.f32.partialorder %v568_v11, inf  ;;  %v574_v14 = vand.u32 2147483648, %v568_v11  ;;  %vm573_vm3 = vcmp.eq.f32.partialorder %v568_v11, 0.0 }
 0x1e3   : > { %v1931_v12 = vpop.eup %1930 }
 0x1e4   : > { %v570_v13 = vmul.f32 %v1931_v12, %v568_v11 }
 0x1e6   : > { %v572_v15 = vsel %vm571_vm2, %v568_v11, %v570_v13  ;;  %v894_v11 = vsel %vm729_vm5, %v889_v10, 0 }
 0x1e7   : > { %v575_v16 = vsel %vm573_vm3, %v574_v14, %v572_v15 }
 0x1e8   : > { %v584_v17 = vadd.f32 1e-06, %v575_v16 }
 0x1ea   : > { %1932 = vrcp.f32 %v584_v17 }
 0x1f4   : > { %v1933_v21 = vpop.eup %1932 }
 0x1f5   : > { %v586_v23 = vmul.f32 %v1933_v21, %v583_v20 }
 0x1f7   : > { %v593_v24 = vadd.f32 %v1653_v22, %v586_v23 }
 0x1f9   : > { %v594_v25 = vpack.c.bf16 %v593_v24, %v593_v24 }
 0x1fb   : > { %1727 = vmatmul.mubr.msk.bf16.vlgmr.msra.gmra.mrb[0].mxu1 %vm556_vm0, %v594_v25 }
 0x1fc   : > { %1732 = vmatprep.mubr.msk.bf16.mxu1 %vm2178_vm1, %v2177_v8 }
 0x2ce   : > { %v655_v27 = vpop.f32.mrb[0].mxu1 }
 0x2cf   : > { %v656_v28 = vadd.f32 %v1654_v26, %v655_v27  ;;  %v1728_v29 = vpop.f32.mrb[1].mxu1 }
 0x2d0   : > { %v658_v30 = vpop.f32.mrb[2].mxu1 }
 0x2d1   : > { %v661_v31 = vmul.f32 0.35355338, %v656_v28  ;;  %v2541_v32 = vpack.c.bf16 %v656_v28, %v656_v28  ;;  %v1729_v33 = vpop.f32.mrb[3].mxu1 }
 0x2d3   : > { %v2543_v34 = vpack.c.bf16 %v661_v31, %v661_v31  ;;  %665 = vrot.lane.b32.xlu1 %v2541_v32, %s2179_s20  ;;  %s2188_s20 = smov 72  }
 0x2d5   : > { %778 = vrot.lane.b32.xlu0 %v2543_v34, %s2180_s12  ;;  %s2189_s12 = smov 40  }
 0x2d7   : > { %780 = vrot.lane.b32.xlu1 %v2541_v32, %s2181_s27  ;;  %s2776_s27 = sld [smem:[#allocation21_spill]] }
 0x345   : > { %v666_v35 = vpop.permute.xlu1 %665 }
 0x346   : > { %v672_v36 = vsel %vm667_vm4, %v666_v35, 0 }
 0x347   : > { %1731 = vmatpush3.bf16.xpose.msra.mxu1 %v672_v36  ;;  %v779_v39 = vpop.permute.xlu0 %778 }
 0x348   : > { %1742 = vmatprep.subr.bf16.mxu1 %v2177_v8 }
 0x349   : > { %v781_v37 = vpop.permute.xlu1 %780 }
 0x34a   : > { %v786_v38 = vsel %vm667_vm4, %v781_v37, 0 }
 0x34e   : > { %1733 = vmatmul.mubr.msk.bf16.vlgmr.msra.gmra.mrb[4].mxu1 %vm667_vm4, %v2543_v34 }
 0x34f   : > { %1743 = vmatpush3.bf16.xpose.msra.mxu1 %v786_v38  ;;  %1744 = vmatprep.mubr.msk.bf16.mxu1 %vm2178_vm1, %v2177_v8 }
 0x350   : > { %1754 = vmatprep.subr.bf16.mxu1 %v2177_v8 }
 0x356   : > { %1745 = vmatmul.mubr.msk.bf16.vlgmr.msra.gmra.mrb[8].mxu1 %vm667_vm4, %v779_v39 }
 0x357   : > { %1756 = vmatprep.mubr.msk.bf16.mxu1 %vm2178_vm1, %v2177_v8  ;;  %1755 = vmatpush3.bf16.msra.mxu1 %v894_v11 }
 0x358   : > { %1766 = vmatprep.subr.bf16.mxu1 %v2177_v8 }
 0x421   : > { %v708_v42 = vpop.f32.mrb[4].mxu1 }
 0x422   : > { %v709_v43 = vadd.f32 %v708_v42, %v2560_v41  ;;  %v1734_v44 = vpop.f32.mrb[5].mxu1 }
 0x423   : > { %v711_v45 = vpop.f32.mrb[6].mxu1 }
 0x424   : > { %v1735_v46 = vpop.f32.mrb[7].mxu1  ;;  %v714_v47 = vsel %vm667_vm4, %v709_v43, -inf }
 0x425   : > { %715 = vmax.xlane.f32.xlu1 %v714_v47 }
 0x429   : > { %v822_v48 = vpop.f32.mrb[8].mxu1 }
 0x42a   : > { %v823_v49 = vadd.f32 %v822_v48, %v2560_v41  ;;  %v1746_v50 = vpop.f32.mrb[9].mxu1 }
 0x42b   : > { %v825_v51 = vpop.f32.mrb[10].mxu1 }
 0x42c   : > { %v1747_v52 = vpop.f32.mrb[11].mxu1  ;;  %v828_v53 = vsel %vm667_vm4, %v823_v49, -inf }
 0x42d   : > { %829 = vmax.xlane.f32.xlu0 %v828_v53 }
 0x436   : > { %724 = vrot.lane.b32.xlu1 %v2541_v32, %s2182_s10  ;;  %s1684_s10 = sshll.u32 %s2287_s19, 7  ;;  %s1502_s19 = scalar_lea.sflag [#allocation4], %s2488_s7 }
 0x443   : > { %838 = vrot.lane.b32.xlu0 %v2541_v32, %s2183_s11  ;;  %s545_s11 = scalar_lea.vmem [#allocation11], %s1650_s21 }
 0x447   : > { %984 = vrot.lane.b32.xlu0 %v2541_v32, %s2184_s14  ;;  %s1515_s14 = sshll.u32 %s545_s11, 4  ;;  %s2686_s14 = int_to_ptr.vmem [resolvable:$true] %s1515_s14 }
 0x448   : > { %s2096_s21 = scalar_lea.vmem %s2686_s14, 128 }
 0x449   : > { %p2097_p6 = scmp.ne.s32.totalorder %s2686_s14, %s2096_s21 }
 0x44b   : > { %982 = vrot.lane.b32.xlu0 %v2543_v34, %s2185_s26  ;;  %p2098_p9 = pnand %p2097_p6, %p2778_p7 }
 0x44d   : > { %p2099_p4 = pneg %p2098_p9 }
 0x4b2   : > { %v716_v54 = vpop.xlane.xlu1 %715 }
 0x4b3   : > { %v717_v55 = vsub.f32 %v709_v43, %v716_v54 }
 0x4b5   : > { %v718_v56 = vmul.f32 1.442695, %v717_v55 }
 0x4b6   : > { %v725_v57 = vpop.permute.xlu1 %724 }
 0x4b7   : > { %1934 = vpow2.f32 %v718_v56  ;;  %v731_v58 = vsel %vm729_vm5, %v725_v57, 0 }
 0x4b8   : > { %1737 = vmatpush3.bf16.msra.mxu0 %v731_v58 }
 0x4b9   : > { %1748 = vmatprep.subr.bf16.mxu0 %v2177_v8 }
 0x4ba   : > { %v830_v59 = vpop.xlane.xlu0 %829 }
 0x4bb   : > { %v831_v60 = vsub.f32 %v823_v49, %v830_v59  ;;  %v1093_v59 = vld [vmem:[%s2735_s6 + $0x8] sm:$0xf] }
 0x4bd   : > { %v832_v61 = vmul.f32 1.442695, %v831_v60  ;;  %v1098_v60 = vsel %vm729_vm5, %v1093_v59, 0 }
 0x4be   : > { %v839_v63 = vpop.permute.xlu0 %838 }
 0x4bf   : > { %1936 = vpow2.f32 %v832_v61  ;;  %v844_v3 = vsel %vm729_vm5, %v839_v63, 0 }
 0x4c1   : > { %v1935_v62 = vpop.eup %1934 }
 0x4c2   : > { %v720_v1 = vsel %vm667_vm4, %v1935_v62, 0.0  ;;  %v723_v2 = vpack.c.bf16 %v1935_v62, %v1935_v62  ;;  %v985_v12 = vpop.permute.xlu0 %984 }
 0x4c3   : > { %721 = vadd.xlane.f32.xlu0 %v720_v1  ;;  %v990_v33 = vsel %vm667_vm4, %v985_v12, 0 }
 0x4c4   : > { %1739 = vmatmul.mubr.msk.bf16.vlgmr.msra.gmra.mrb[0].mxu0 %vm667_vm4, %v723_v2 }
 0x4c5   : > { %1749 = vmatpush3.bf16.msra.mxu0 %v844_v3  ;;  %1750 = vmatprep.mubr.msk.bf16.mxu0 %vm2178_vm1, %v2177_v8 }
 0x4c6   : > { %1760 = vmatprep.subr.bf16.mxu0 %v2177_v8  ;;  %v983_v13 = vpop.permute.xlu0 %982 }
 0x4c9   : > { %v1937_v4 = vpop.eup %1936 }
 0x4ca   : > { %v834_v5 = vsel %vm667_vm4, %v1937_v4, 0.0  ;;  %v837_v6 = vpack.c.bf16 %v1937_v4, %v1937_v4 }
 0x4cb   : > { %835 = vadd.xlane.f32.xlu1 %v834_v5 }
 0x4cc   : > { %1751 = vmatmul.mubr.msk.bf16.vlgmr.msra.gmra.mrb[4].mxu0 %vm667_vm4, %v837_v6 }
 0x4cd   : > { %1762 = vmatprep.mubr.msk.bf16.mxu0 %vm2178_vm1, %v2177_v8  ;;  %1761 = vmatpush3.bf16.msra.mxu0 %v940_v9 }
 0x4ce   : > { %1772 = vmatprep.subr.bf16.mxu0 %v2177_v8 }
 0x4d9   : > { %1141 = vrot.lane.b32.xlu0 %v2543_v34, %s2186_s23 }
 0x4dc   : > { %1042 = vrot.lane.b32.xlu1 %v2541_v32, %s2187_s18  ;;  %s2773_s18 = sld [smem:[#allocation18_spill]] }
 0x550   : > { %v722_v14 = vpop.xlane.xlu0 %721 }
 0x551   : > { %1938 = vrcp.f32 %v722_v14 }
 0x554   : > { %v1142_v58 = vpop.permute.xlu0 %1141 }
 0x558   : > { %v836_v15 = vpop.xlane.xlu1 %835 }
 0x559   : > { %1940 = vrcp.f32 %v836_v15 }
 0x55b   : > { %v1939_v16 = vpop.eup %1938 }
 0x55c   : > { %v1043_v20 = vpop.permute.xlu1 %1042 }
 0x55d   : > { %v1048_v24 = vsel %vm729_vm5, %v1043_v20, 0 }
 0x563   : > { %v1941_v25 = vpop.eup %1940 }
 0x597   : > { %v767_v17 = vpop.f32.mrb[0].mxu0 }
 0x598   : > { %v774_v18 = vmul.f32 %v1939_v16, %v767_v17  ;;  %v1740_v19 = vpop.f32.mrb[1].mxu0 }
 0x599   : > { %v770_v21 = vpop.f32.mrb[2].mxu0 }
 0x59a   : > { %v775_v22 = vpack.c.bf16 %v774_v18, %v774_v18  ;;  %v1741_v23 = vpop.f32.mrb[3].mxu0 }
 0x59c   : > { %1763 = vmatmul.mubr.msk.bf16.vlgmr.msra.gmra.mrb[8].mxu0 %vm667_vm4, %v775_v22 }
 0x59d   : > { %1773 = vmatpush3.bf16.msra.mxu0 %v1048_v24  ;;  %1774 = vmatprep.mubr.msk.bf16.mxu0 %vm2178_vm1, %v2177_v8 }
 0x59e   : > { %1784 = vmatprep.subr.bf16.mxu0 %v2177_v8 }
 0x59f   : > { %v880_v26 = vpop.f32.mrb[4].mxu0 }
 0x5a0   : > { %v887_v27 = vmul.f32 %v1941_v25, %v880_v26  ;;  %v1752_v28 = vpop.f32.mrb[5].mxu0 }
 0x5a1   : > { %v883_v29 = vpop.f32.mrb[6].mxu0 }
 0x5a2   : > { %v888_v30 = vpack.c.bf16 %v887_v27, %v887_v27  ;;  %v1753_v31 = vpop.f32.mrb[7].mxu0 }
 0x5a4   : > { %1757 = vmatmul.mubr.msk.bf16.vlgmr.msra.gmra.mrb[12].mxu1 %vm667_vm4, %v888_v30 }
 0x5a5   : > { %1767 = vmatpush3.bf16.xpose.msra.mxu1 %v990_v33  ;;  %1768 = vmatprep.mubr.msk.bf16.mxu1 %vm2178_vm1, %v2177_v8 }
 0x5a6   : > { %1778 = vmatprep.subr.bf16.mxu1 %v2177_v8 }
 0x5ac   : > { %1769 = vmatmul.mubr.msk.bf16.vlgmr.msra.gmra.mrb[16].mxu1 %vm667_vm4, %v983_v13 }
 0x5ad   : > { %1780 = vmatprep.mubr.msk.bf16.mxu1 %vm2178_vm1, %v2177_v8  ;;  %1779 = vmatpush3.bf16.msra.mxu1 %v1098_v60 }
 0x5ae   : > { %1790 = vmatprep.subr.bf16.mxu1 %v2177_v8 }
 0x66f   : > { %v976_v34 = vpop.f32.mrb[8].mxu0 }
 0x670   : > { %v1764_v35 = vpop.f32.mrb[9].mxu0 }
 0x671   : > { %v979_v36 = vpop.f32.mrb[10].mxu0 }
 0x672   : > { %v1765_v37 = vpop.f32.mrb[11].mxu0 }
 0x677   : > { %v930_v38 = vpop.f32.mrb[12].mxu1 }
 0x678   : > { %v2607_v39 = vadd.f32 %v976_v34, %v930_v38  ;;  %v1758_v40 = vpop.f32.mrb[13].mxu1  ;;  %v1670_v38 = vld [vmem:[#allocation7] ss:$0 sm:$0xff] }
 0x679   : > { %v933_v42 = vpop.f32.mrb[14].mxu1 }
 0x67a   : > { %v1759_v43 = vpop.f32.mrb[15].mxu1 }
 0x67f   : > { %v1026_v44 = vpop.f32.mrb[16].mxu1 }
 0x680   : > { %v1027_v45 = vadd.f32 %v1026_v44, %v2560_v41  ;;  %v1770_v46 = vpop.f32.mrb[17].mxu1 }
 0x681   : > { %v1029_v47 = vpop.f32.mrb[18].mxu1 }
 0x682   : > { %v1771_v48 = vpop.f32.mrb[19].mxu1  ;;  %v1032_v49 = vsel %vm667_vm4, %v1027_v45, -inf }
 0x683   : > { %1033 = vmax.xlane.f32.xlu1 %v1032_v49 }
 0x694   : > { %1143 = vrot.lane.b32.xlu1 %v2541_v32, %s2188_s20  ;;  %s2774_s20 = sld [smem:[#allocation20_spill]] }
 0x710   : > { %v1034_v50 = vpop.xlane.xlu1 %1033 }
 0x711   : > { %v1035_v51 = vsub.f32 %v1027_v45, %v1034_v50  ;;  %v1924_v50 = vld [vmem:[%s2773_s18] sm:$0xff]  }
 0x713   : > { %v1036_v52 = vmul.f32 1.442695, %v1035_v51  ;;  %v1926_v51 = vld [vmem:[%s2774_s20] sm:$0xff]  }
 0x714   : > { %v1144_v54 = vpop.permute.xlu1 %1143 }
 0x715   : > { %1942 = vpow2.f32 %v1036_v52  ;;  %v1149_v57 = vsel %vm667_vm4, %v1144_v54, 0  ;;  %v1927_v52 = vld [vmem:[%s2774_s20 + $0x8] sm:$0xff]  }
 0x71f   : > { %v1943_v53 = vpop.eup %1942 }
 0x720   : > { %v1038_v55 = vsel %vm667_vm4, %v1943_v53, 0.0  ;;  %v1041_v56 = vpack.c.bf16 %v1943_v53, %v1943_v53 }
 0x721   : > { %1039 = vadd.xlane.f32.xlu1 %v1038_v55 }
 0x722   : > { %1775 = vmatmul.mubr.msk.bf16.vlgmr.msra.gmra.mrb[12].mxu0 %vm667_vm4, %v1041_v56 }
 0x723   : > { %1785 = vmatpush3.bf16.xpose.msra.mxu0 %v1149_v57  ;;  %1786 = vmatprep.mubr.msk.bf16.mxu0 %vm2178_vm1, %v2177_v8 }
 0x724   : > { %1796 = vmatprep.subr.bf16.mxu0 %v2177_v8 }
 0x72a   : > { %1787 = vmatmul.mubr.msk.bf16.vlgmr.msra.gmra.mrb[16].mxu0 %vm667_vm4, %v1142_v58 }
 0x72b   : > { %1798 = vmatprep.mubr.msk.bf16.mxu0 %vm2178_vm1, %v2177_v8 }
 0x732   : > { %1201 = vrot.lane.b32.xlu1 %v2541_v32, %s2189_s12  ;;  %s2100_s12 = sshll.u32 %s2190_s5, 4  ;;  %s2101_s12 = int_to_ptr.vmem [resolvable:$false] %s2100_s12 }
 0x733   : > { %p2103_p3 = scmp.lt.s32.totalorder %s2686_s14, %s2101_s12 }
 0x7ae   : > { %v1040_v61 = vpop.xlane.xlu1 %1039 }
 0x7af   : > { %1944 = vrcp.f32 %v1040_v61 }
 0x7b2   : > { %v1202_v3 = vpop.permute.xlu1 %1201 }
 0x7b3   : > { %v1207_v32 = vsel %vm729_vm5, %v1202_v3, 0 }
 0x7b9   : > { %v1945_v62 = vpop.eup %1944 }
 0x7f5   : > { %v1084_v63 = vpop.f32.mrb[12].mxu0 }
 0x7f6   : > { %v1091_v1 = vmul.f32 %v1945_v62, %v1084_v63  ;;  %v1776_v2 = vpop.f32.mrb[13].mxu0  ;;  %v1671_v62 = vld [vmem:[#allocation8] ss:$0 sm:$0xff] }
 0x7f7   : > { %v1087_v4 = vpop.f32.mrb[14].mxu0  ;;  %v1672_v2 = vld [vmem:[#allocation10] ss:$0 sm:$0xff] }
 0x7f8   : > { %v1092_v5 = vpack.c.bf16 %v1091_v1, %v1091_v1  ;;  %v1777_v6 = vpop.f32.mrb[15].mxu0 }
 0x7f9   : > { %v1928_v6 = vld [vmem:[%s2774_s20 + $0x10] sm:$0xff]  }
 0x7fa   : > { %1781 = vmatmul.mubr.msk.bf16.vlgmr.msra.gmra.mrb[20].mxu1 %vm667_vm4, %v1092_v5 }
 0x7fb   : > { %1791 = vmatpush3.bf16.msra.mxu1 %v1207_v32  ;;  %1792 = vmatprep.mubr.msk.bf16.mxu1 %vm2178_vm1, %v2177_v8  ;;  %v1929_v32 = vld [vmem:[%s2774_s20 + $0x18] sm:$0xff]  }
 0x7fc   : > { %1802 = vmatprep.subr.bf16.mxu1 %v2177_v8 }
 0x7fd   : > { %v1185_v7 = vpop.f32.mrb[16].mxu0 }
 0x7fe   : > { %v1186_v9 = vadd.f32 %v1185_v7, %v2560_v41  ;;  %v1788_v10 = vpop.f32.mrb[17].mxu0  ;;  %v1252_v41 = vld [vmem:[%s2735_s6 + $0xc] sm:$0xf]  ;;  %v1673_v7 = vld [vmem:[%s2775_s24] ss:$0 sm:$0xff]  ;;  %s2684_s24 = scalar_lea.hbm %s2777_s22, %s1684_s10 }
 0x7ff   : > { %v1188_v11 = vpop.f32.mrb[18].mxu0  ;;  %v1257_v20 = vsel %vm729_vm5, %v1252_v41, 0 }
 0x800   : > { %v1789_v12 = vpop.f32.mrb[19].mxu0  ;;  %v1191_v13 = vsel %vm667_vm4, %v1186_v9, -inf  ;;  %1797 = vmatpush3.bf16.msra.mxu0 %v1257_v20 }
 0x801   : > { %1192 = vmax.xlane.f32.xlu0 %v1191_v13  ;;  %1810 = vmatprep.subr.bf16.mxu0 %v2177_v8 }
 0x88e   : > { %v1193_v14 = vpop.xlane.xlu0 %1192 }
 0x88f   : > { %v1194_v15 = vsub.f32 %v1186_v9, %v1193_v14 }
 0x891   : > { %v1195_v16 = vmul.f32 1.442695, %v1194_v15 }
 0x893   : > { %1946 = vpow2.f32 %v1195_v16  ;;  %v1682_v16 = vld [vmem:[%s2776_s27] ss:$0 sm:$0xff]  ;;  %s2102_s27 = scalar_lea.vmem %s2101_s12, 256 }
 0x894   : > { %p2104_p13 = scmp.lt.s32.totalorder %s2102_s27, %s2096_s21 }
 0x896   : > { %p2105_p0 = por %p2104_p13, %p2103_p3 }
 0x898   : > { %p2106_p2 = pnand %p2105_p0, %p2099_p4 }
 0x89d   : > { %v1947_v17 = vpop.eup %1946 }
 0x89e   : > { %v1197_v18 = vsel %vm667_vm4, %v1947_v17, 0.0  ;;  %v1200_v19 = vpack.c.bf16 %v1947_v17, %v1947_v17 }
 0x89f   : > { %1198 = vadd.xlane.f32.xlu0 %v1197_v18 }
 0x8a0   : > { %1793 = vmatmul.mubr.msk.bf16.vlgmr.msra.gmra.mrb[24].mxu1 %vm667_vm4, %v1200_v19 }
 0x8a1   : > { %1806 = vmatprep.mubr.msk.bf16.mxu1 %vm2178_vm1, %v2177_v8  ;;  %1803 = vmatpush3.bf16.msra.mxu1 %v1924_v50 }
 0x8a2   : > { %1804 = vmatprep.subr.bf16.mxu1 %v2177_v8 }
 0x8cd   : > { %v1134_v21 = vpop.f32.mrb[20].mxu1 }
 0x8ce   : > { %v1140_v22 = vadd.f32 %v1134_v21, %v2607_v39  ;;  %v1782_v23 = vpop.f32.mrb[21].mxu1 }
 0x8cf   : > { %v1137_v24 = vpop.f32.mrb[22].mxu1 }
 0x8d0   : > { %v1783_v25 = vpop.f32.mrb[23].mxu1 }
 0x92c   : > { %v1199_v26 = vpop.xlane.xlu0 %1198 }
 0x92d   : > { %1948 = vrcp.f32 %v1199_v26 }
 0x937   : > { %v1949_v27 = vpop.eup %1948 }
 0x973   : > { %v1243_v28 = vpop.f32.mrb[24].mxu1 }
 0x974   : > { %v1250_v29 = vmul.f32 %v1949_v27, %v1243_v28  ;;  %v1794_v30 = vpop.f32.mrb[25].mxu1 }
 0x975   : > { %v1246_v31 = vpop.f32.mrb[26].mxu1 }
 0x976   : > { %v1251_v33 = vpack.c.bf16 %v1250_v29, %v1250_v29  ;;  %v1795_v34 = vpop.f32.mrb[27].mxu1 }
 0x978   : > { %1799 = vmatmul.mubr.msk.bf16.vlgmr.msra.gmra.mrb[20].mxu0 %vm667_vm4, %v1251_v33 }
 0x979   : > { %1818 = vmatprep.mubr.msk.bf16.mxu0 %vm2178_vm1, %v2177_v8  ;;  %1811 = vmatpush3.bf16.msra.mxu0 %v1926_v51 }
 0x97a   : > { %1812 = vmatprep.subr.bf16.mxu0 %v2177_v8 }
 0x97d   : > { %1813 = vmatpush3.bf16.msra.mxu0 %v1927_v52 }
 0x97e   : > { %1814 = vmatprep.subr.bf16.mxu0 %v2177_v8 }
 0x981   : > { %1815 = vmatpush3.bf16.msra.mxu0 %v1928_v6 }
 0x982   : > { %1816 = vmatprep.subr.bf16.mxu0 %v2177_v8 }
 0x985   : > { %1817 = vmatpush3.bf16.msra.mxu0 %v1929_v32 }
 0xa4b   : > { %v1293_v35 = vpop.f32.mrb[20].mxu0 }
 0xa4c   : > { %v1299_v36 = vadd.f32 %v1293_v35, %v1140_v22  ;;  %v1800_v37 = vpop.f32.mrb[21].mxu0 }
 0xa4d   : > { %v1296_v39 = vpop.f32.mrb[22].mxu0 }
 0xa4e   : > { %v1300_v40 = vadd.f32 %v1299_v36, %v2511_v0  ;;  %v1801_v42 = vpop.f32.mrb[23].mxu0  ;;  %v1925_v0 = vld [vmem:[%s2773_s18 + $0x8] sm:$0xff]  }
 0xa4f   : > { %1805 = vmatpush3.bf16.msra.mxu1 %v1925_v0 }
 0xa50   : > { %v1308_v43 = vadd.f32 %v1670_v38, %v1300_v40 }
 0xa52   : > { %v1311_v44 = vsel %vm556_vm0, %v1308_v43, 0.0 }
 0xa53   : > { %1312 = vadd.xlane.f32.xlu1 %v1311_v44 }
 0xae0   : > { %v1313_v45 = vpop.xlane.xlu1 %1312 }
 0xae1   : > { %v1314_v46 = vmul.f32 0.03125, %v1313_v45  ;;  %v1328_v61 = vsub.f32 %v1308_v43, %v1313_v45 }
 0xae3   : > { %v1315_v47 = vsub.f32 %v1308_v43, %v1314_v46  ;;  %v1335_v63 = vmul.f32 %v1671_v62, %v1328_v61 }
 0xae5   : > { %v1316_v48 = vmul.f32 %v1315_v47, %v1315_v47 }
 0xae7   : > { %v1317_v49 = vsel %vm556_vm0, %v1316_v48, 0.0 }
 0xae8   : > { %1318 = vadd.xlane.f32.xlu0 %v1317_v49 }
 0xb75   : > { %v1319_v53 = vpop.xlane.xlu0 %1318 }
 0xb76   : > { %v1320_v54 = vmul.f32 0.032258064, %v1319_v53 }
 0xb78   : > { %1950 = vrsqrt.f32 %v1320_v54  ;;  %vm1323_vm6 = vcmp.eq.f32.partialorder %v1320_v54, inf  ;;  %v1326_v57 = vand.u32 2147483648, %v1320_v54  ;;  %vm1325_vm7 = vcmp.eq.f32.partialorder %v1320_v54, 0.0 }
 0xb82   : > { %v1951_v55 = vpop.eup %1950 }
 0xb83   : > { %v1322_v56 = vmul.f32 %v1951_v55, %v1320_v54 }
 0xb85   : > { %v1324_v58 = vsel %vm1323_vm6, %v1320_v54, %v1322_v56 }
 0xb86   : > { %v1327_v59 = vsel %vm1325_vm7, %v1326_v57, %v1324_v58 }
 0xb87   : > { %v1336_v60 = vadd.f32 1e-06, %v1327_v59 }
 0xb89   : > { %1952 = vrcp.f32 %v1336_v60 }
 0xb93   : > { %v1953_v1 = vpop.eup %1952 }
 0xb94   : > { %v1338_v3 = vmul.f32 %v1953_v1, %v1335_v63 }
 0xb96   : > { %v1345_v4 = vadd.f32 %v1672_v2, %v1338_v3 }
 0xb98   : > { %v1346_v5 = vpack.c.bf16 %v1345_v4, %v1345_v4 }
 0xb9a   : > { %1807 = vmatmul.mubr.msk.bf16.vlgmr.msra.gmra.mrb[28].mxu1 %vm556_vm0, %v1346_v5 }
 0xc6d   : > { %v1407_v9 = vpop.f32.mrb[28].mxu1 }
 0xc6e   : > { %v1408_v10 = vadd.f32 %v1673_v7, %v1407_v9  ;;  %v1808_v11 = vpop.f32.mrb[29].mxu1 }
 0xc6f   : > { %v1410_v12 = vpop.f32.mrb[30].mxu1 }
 0xc70   : > { %v1413_v13 = vmax.f32 %v1408_v10, 0.0  ;;  %v1809_v14 = vpop.f32.mrb[31].mxu1 }
 0xc72   : > { %v1414_v15 = vpack.c.bf16 %v1413_v13, %v1413_v13 }
 0xc74   : > { %1819 = vmatmul.mubr.msk.bf16.vlgmr.msra.gmra.mrb[24].mxu0 %vm1447_vm8, %v1414_v15 }
 0xd47   : > { %v1485_v8 = vpop.f32.mrb[24].mxu0 }
 0xd48   : > { %v1491_v17 = vadd.f32 %v1485_v8, %v1308_v43  ;;  %v1820_v18 = vpop.f32.mrb[25].mxu0 }
 0xd49   : > { %v1488_v19 = vpop.f32.mrb[26].mxu0 }
 0xd4a   : > { %v1499_v41 = vadd.f32 %v1682_v16, %v1491_v17  ;;  %v1821_v20 = vpop.f32.mrb[27].mxu0 }
 0xd4c   : > { %1500 = vst.msk [vmem:[%s545_s11] sm:$0xff] %vm556_vm0, %v1499_v41 }
 0xd4d   : > { %2109 = shalt.err (!%p2106_p2)
}
 0xd4e   : > { %s2110_s7 = scalar_lea.hbm %s2684_s24, 128  ;;  %s2114_s26 = scalar_lea.hbm %s2777_s22, 256 }
 0xd4f   : > { %p2111_p8 = scmp.ne.s32.totalorder %s2684_s24, %s2110_s7  ;;  %p2115_p12 = scmp.lt.u32.totalorder %s2684_s24, %s2777_s22 }
 0xd50   : > { %p2116_p1 = scmp.lt.u32.totalorder %s2114_s26, %s2110_s7  ;;  %p2118_p6 = scmp.lt.u32.totalorder %s2110_s7, %s2684_s24 }
 0xd51   : > { %p2112_p10 = pnand %p2111_p8, %p2778_p7 }
 0xd52   : > { %p2117_p5 = por %p2116_p1, %p2115_p12 }
 0xd53   : > { %p2113_p11 = pneg %p2112_p10 }
 0xd54   : > { %p2119_p9 = por %p2118_p6, %p2117_p5 }
 0xd56   : > { %p2120_p4 = pnand %p2119_p9, %p2113_p11 }
 0xd58   : > { %2123 = shalt.err (!%p2120_p4)
}
 0xd59   : > { %1840 = dma.vmem_to_hbm [thread:$0]  (%p2778_p7), %s2686_s14, 128, %s2684_s24, %s1502_s19  }
 0xd5a PF: > { %s1527_s21 = sand.u32 1, %s2158_s29   ;;  %p2779_p3 = scmp.ne.s32.totalorder %s2766_s28, 0 }
 0xd5b   : > { %p2780_p13 = scmp.ge.s32.totalorder %s2170_s16, 2  ;;  %s1528_s12 = scalar_lea.sflag [#allocation4], %s1527_s21 }
 0xd5d   : > { %p1860_p0 = pnand %p2780_p13, %p2779_p3 }
 0xd5f   : > { %2153 = dma.done.wait (!%p1860_p0), %s1528_s12, 128  }
 0xd60   : > { %2155 = vsyncadd (!%p1860_p0), %s1528_s12, 4294967168  ;;  %p29_p2 = scmp.ge.s32.totalorder %s2412_s25, 4   ;;  %s2781_s29 = smov %s2162_s30 }
 0xd61   : > { %s2782_s30 = smov %s2166_s15  ;;  %s2783_s15 = smov %s2423_s17 }
 0xd62   : > { %s2784_s16 = smov %s2412_s25  ;;  %31 = sbr.rel (!%p29_p2) target bundleno = 15 (0xf), region = 140 }
 0xd69   :  { %1533 = vsyncpa [#allocation3], 1 }
 0xd6a   :  { %1535 = vsyncpa [#allocation3 + $0x1], 1 }
 0xd6b   :  { %1536 = vsyncpa [#allocation6], 1 }
 0xd6c   :  { %1537 = vsyncpa [#allocation9], 1 }
 0xd6d   :  { %1538 = vsyncpa [#allocation4], 1 }
 0xd6e   :  { %1540 = vsyncpa [#allocation4 + $0x1], 1 }

// kernel: tpu_custom_call.1
= control target key start
LH: loop header
LB: loop body
LE: loop exit
PB: predicated region body
PF: predicated region fallthrough
CT: control target
= control target key end

     0   :  { %s2729_s0 = inlined_call_operand.vmem [shape: f32[2,8,32], index: 0, kind: input, shape index: {}]   ;;  %s2730_s1 = inlined_call_operand.hbm [shape: bf16[2,8,8], index: 1, kind: input, shape index: {}]   ;;  %s2731_s2 = inlined_call_operand.vmem [shape: f32[1,32], index: 2, kind: input, shape index: {}]   ;;  %s2732_s3 = inlined_call_operand.vmem [shape: f32[1,32], index: 3, kind: input, shape index: {}]   ;;  %s2733_s4 = inlined_call_operand.vmem [shape: bf16[32,96], index: 4, kind: input, shape index: {}]   ;;  %s2734_s5 = inlined_call_operand.hbm [shape: f32[1,96], index: 5, kind: input, shape index: {}]   ;;  %s2735_s6 = inlined_call_operand.vmem [shape: bf16[32,32], index: 6, kind: input, shape index: {}]   ;;  %s2736_s7 = inlined_call_operand.hbm [shape: f32[1,32], index: 7, kind: input, shape index: {}]   ;;  %s2737_s8 = inlined_call_operand.hbm [shape: f32[1,32], index: 8, kind: input, shape index: {}]   ;;  %s2738_s9 = inlined_call_operand.hbm [shape: f32[1,32], index: 9, kind: input, shape index: {}]   ;;  %s2739_s10 = inlined_call_operand.vmem [shape: bf16[32,64], index: 10, kind: input, shape index: {}]   ;;  %s2740_s11 = inlined_call_operand.vmem [shape: f32[1,64], index: 11, kind: input, shape index: {}]   ;;  %s2741_s12 = inlined_call_operand.vmem [shape: bf16[64,32], index: 12, kind: input, shape index: {}]   ;;  %s2742_s13 = inlined_call_operand.vmem [shape: f32[1,32], index: 13, kind: input, shape index: {}]   ;;  %s2743_s14 = inlined_call_operand.hbm [shape: f32[2,8,32], index: 14, kind: output, shape index: {}]  }
   0x1   :  { %2750 = sst [smem:[#allocation16_spill]] %s2734_s5 }
   0x2   :  { %2751 = sst [smem:[#allocation17_spill]] %s2736_s7 }
   0x3   :  { %2752 = sst [smem:[#allocation18_spill]] %s2739_s10 }
   0x4   :  { %2753 = sst [smem:[#allocation19_spill]] %s2740_s11 }
   0x5   :  { %2754 = sst [smem:[#allocation20_spill]] %s2741_s12 }
   0x6   :  { %2755 = sst [smem:[#allocation21_spill]] %s2742_s13 }
   0x7   :  { %2756 = sst [smem:[#allocation22_spill]] %s2743_s14 }
   0x8   :  { %19 = vsyncpa [#allocation3], 0 }
   0x9   :  { %21 = vsyncpa [#allocation3 + $0x1], 0 }
   0xa   :  { %22 = vsyncpa [#allocation6], 0 }
   0xb   :  { %23 = vsyncpa [#allocation9], 0 }
   0xc   :  { %24 = vsyncpa [#allocation4], 0 }
   0xd   :  { %26 = vsyncpa [#allocation4 + $0x1], 0  ;;  %s2266_s29 = smov 0   ;;  %s2268_s30 = smov 0  }
   0xe   :  { %s2270_s15 = smov 0   ;;  %s2272_s16 = smov 0  }
   0xf LB: > { %s2172_s17 = smov [#allocation5]   ;;  %s2287_s19 = sadd.s32 4294967295, %s2170_s16   ;;  %s2170_s16 = sphi %s2272_s16, %s2784_s16   ;;  %s2166_s15 = sphi %s2270_s15, %s2783_s15   ;;  %s2162_s30 = sphi %s2268_s30, %s2782_s30   ;;  %s2158_s29 = sphi %s2266_s29, %s2781_s29  }
  0x10   : > { %s389_s18 = sshll.u32 %s2172_s17, 4  ;;  %p1636_p0 = scmp.ge.s32.totalorder %s2170_s16, 1  ;;  %s2292_s18 = int_to_ptr.vmem [resolvable:$true] %s389_s18 }
  0x11   : > { %p2747_p1 = scmp.eq.s32.totalorder %s2287_s19, 0  ;;  %p367_p2 = scmp.lt.s32.totalorder %s2170_s16, 3 }
  0x12   : > { %s2173_s21 = smov [#allocation8]   ;;  %s2174_s23 = smov [#allocation7]  }
  0x13   : > { %p2294_p3 = pnand %p1636_p0, %p367_p2  ;;  %s414_s22 = sshll.u32 %s2173_s21, 4  ;;  %s2301_s22 = int_to_ptr.vmem [resolvable:$true] %s414_s22 }
  0x14   : > { %s403_s24 = sshll.u32 %s2174_s23, 4  ;;  %s2175_s26 = smov [#allocation10]   ;;  %s2309_s24 = int_to_ptr.vmem [resolvable:$true] %s403_s24 }
  0x15   : > { %s2757_s20 = scalar_select %p2294_p3, 1, 0 }
  0x16   : > { %p1842_p5 = pneg %p2294_p3  ;;  %s2311_s27 = sshll.u32 %s2175_s26, 4  ;;  %s426_s27 = int_to_ptr.vmem [resolvable:$true] %s2311_s27 }
  0x17   : > { %s2759_s5 = sld [smem:[#allocation16_spill]] }
  0x18   : > { %p2305_p6 = pnand %p1842_p5, %p2747_p1 }
  0x1a   : > { %p2321_p8 = pneg %p2305_p6 }
  0x1d   : > { %s1954_s14 = scalar_lea.hbm %s2759_s5, 16 }
  0x1e   : > { %p1955_p7 = scmp.ne.s32.totalorder %s2759_s5, %s1954_s14  ;;  %p1961_p11 = scmp.lt.u32.totalorder %s1954_s14, %s2759_s5 }
  0x20   : > { %p1957_p9 = pnand %p2321_p8, %p1955_p7 }
  0x22   : > { %p1958_p10 = pneg %p1957_p9 }
  0x24   : > { %p1963_p12 = pnand %p1961_p11, %p1958_p10 }
  0x26   : > { %1966 = shalt.err (!%p1963_p12)
}
  0x27   : > { %s1967_s13 = scalar_lea.vmem %s2292_s18, 16  ;;  %s1974_s28 = scalar_lea.vmem %s2292_s18, 32 }
  0x28   : > { %p1968_p13 = scmp.ne.s32.totalorder %s2292_s18, %s1967_s13  ;;  %p1975_p5 = scmp.lt.s32.totalorder %s2292_s18, %s2292_s18 }
  0x29   : > { %p1976_p7 = scmp.lt.s32.totalorder %s1974_s28, %s1967_s13 }
  0x2a   : > { %p1970_p0 = pnand %p1968_p13, %p2321_p8 }
  0x2b   : > { %p1977_p9 = por %p1976_p7, %p1975_p5 }
  0x2c   : > { %p1971_p2 = pneg %p1970_p0 }
  0x2e   : > { %p1978_p4 = pnand %p1977_p9, %p1971_p2 }
  0x30   : > { %1981 = shalt.err (!%p1978_p4)
}
  0x31   : > { %1845 = dma.hbm_to_vmem [thread:$0]  (!%p2305_p6), %s2759_s5, 16, %s2292_s18, [#allocation6]  }
  0x32   : > { %s1982_s26 = scalar_lea.hbm %s2737_s8, 16 }
  0x33   : > { %p1983_p10 = scmp.ne.s32.totalorder %s2737_s8, %s1982_s26  ;;  %p1989_p4 = scmp.lt.u32.totalorder %s1982_s26, %s2737_s8 }
  0x35   : > { %p1985_p11 = pnand %p1983_p10, %p2321_p8 }
  0x37   : > { %p1986_p12 = pneg %p1985_p11 }
  0x39   : > { %p1991_p13 = pnand %p1989_p4, %p1986_p12 }
  0x3b   : > { %1994 = shalt.err (!%p1991_p13)
}
  0x3c   : > { %s1995_s18 = scalar_lea.vmem %s2301_s22, 16  ;;  %s2002_s10 = scalar_lea.vmem %s2301_s22, 32 }
  0x3d   : > { %p1996_p0 = scmp.ne.s32.totalorder %s2301_s22, %s1995_s18  ;;  %p2003_p7 = scmp.lt.s32.totalorder %s2301_s22, %s2301_s22 }
  0x3e   : > { %p2004_p9 = scmp.lt.s32.totalorder %s2002_s10, %s1995_s18 }
  0x3f   : > { %p1998_p2 = pnand %p1996_p0, %p2321_p8 }
  0x40   : > { %p2005_p10 = por %p2004_p9, %p2003_p7 }
  0x41   : > { %p1999_p5 = pneg %p1998_p2 }
  0x43   : > { %p2006_p11 = pnand %p2005_p10, %p1999_p5 }
  0x45   : > { %2009 = shalt.err (!%p2006_p11)
}
  0x46   : > { %1851 = dma.hbm_to_vmem [thread:$0]  (!%p2305_p6), %s2737_s8, 16, %s2301_s22, [#allocation9]  }
  0x47   : > { %s2761_s7 = sld [smem:[#allocation17_spill]] }
  0x4d   : > { %s2010_s21 = scalar_lea.hbm %s2761_s7, 16 }
  0x4e   : > { %p2011_p12 = scmp.ne.s32.totalorder %s2761_s7, %s2010_s21  ;;  %p2017_p0 = scmp.lt.u32.totalorder %s2010_s21, %s2761_s7 }
  0x50   : > { %p2013_p4 = pnand %p2011_p12, %p2321_p8 }
  0x52   : > { %p2014_p13 = pneg %p2013_p4 }
  0x54   : > { %p2019_p2 = pnand %p2017_p0, %p2014_p13 }
  0x56   : > { %2022 = shalt.err (!%p2019_p2)
}
  0x57   : > { %s2023_s22 = scalar_lea.vmem %s2309_s24, 16  ;;  %s2030_s10 = scalar_lea.vmem %s2309_s24, 32 }
  0x58   : > { %p2024_p5 = scmp.ne.s32.totalorder %s2309_s24, %s2023_s22  ;;  %p2031_p10 = scmp.lt.s32.totalorder %s2309_s24, %s2309_s24 }
  0x59   : > { %p2032_p11 = scmp.lt.s32.totalorder %s2030_s10, %s2023_s22 }
  0x5a   : > { %p2026_p7 = pnand %p2024_p5, %p2321_p8 }
  0x5b   : > { %p2033_p12 = por %p2032_p11, %p2031_p10 }
  0x5c   : > { %p2027_p9 = pneg %p2026_p7 }
  0x5e   : > { %p2034_p4 = pnand %p2033_p12, %p2027_p9 }
  0x60   : > { %2037 = shalt.err (!%p2034_p4)
}
  0x61   : > { %1848 = dma.hbm_to_vmem [thread:$0]  (!%p2305_p6), %s2761_s7, 16, %s2309_s24, [#allocation6]  }
  0x62   : > { %s2038_s21 = scalar_lea.hbm %s2738_s9, 16 }
  0x63   : > { %p2039_p13 = scmp.ne.s32.totalorder %s2738_s9, %s2038_s21  ;;  %p2045_p5 = scmp.lt.u32.totalorder %s2038_s21, %s2738_s9 }
  0x65   : > { %p2041_p0 = pnand %p2039_p13, %p2321_p8 }
  0x67   : > { %p2042_p2 = pneg %p2041_p0 }
  0x69   : > { %p2047_p7 = pnand %p2045_p5, %p2042_p2 }
  0x6b   : > { %2050 = shalt.err (!%p2047_p7)
}
  0x6c   : > { %s2051_s22 = scalar_lea.vmem %s426_s27, 16  ;;  %s2058_s24 = scalar_lea.vmem %s426_s27, 32 }
  0x6d   : > { %p2052_p9 = scmp.ne.s32.totalorder %s426_s27, %s2051_s22  ;;  %p2059_p12 = scmp.lt.s32.totalorder %s426_s27, %s426_s27 }
  0x6e   : > { %p2060_p4 = scmp.lt.s32.totalorder %s2058_s24, %s2051_s22 }
  0x6f   : > { %p2054_p10 = pnand %p2052_p9, %p2321_p8 }
  0x70   : > { %p2061_p1 = por %p2060_p4, %p2059_p12 }
  0x71   : > { %p2055_p11 = pneg %p2054_p10 }
  0x73   : > { %p2062_p3 = pnand %p2061_p1, %p2055_p11 }
  0x75   : > { %2065 = shalt.err (!%p2062_p3)
}
  0x76   : > { %1854 = dma.hbm_to_vmem [thread:$0]  (!%p2305_p6), %s2738_s9, 16, %s426_s27, [#allocation9]  }
  0x77   : > { %s1635_s23 = sadd.s32 4294967294, %s2170_s16   ;;  %s2412_s25 = sadd.s32 1, %s2170_s16  }
  0x78   : > { %s62_s11 = ssub.s32 %s2170_s16, %s2412_s25  ;;  %s65_s14 = sadd.s32 1, %s2166_s15 }
  0x79   : > { %p63_p1 = scmp.eq.s32.totalorder %s62_s11, 0  ;;  %p72_p3 = scmp.ne.s32.totalorder %s2166_s15, %s2162_s30 }
  0x7a   : > { %p73_p8 = scmp.eq.s32.totalorder %s2170_s16, 0  ;;  %p78_p13 = scmp.ne.s32.totalorder %s2162_s30, %s2158_s29 }
  0x7b   : > { %s2423_s17 = scalar_select %p63_p1, %s2166_s15, %s65_s14  }
  0x7c   : > { %p2425_p0 = por %p73_p8, %p72_p3  ;;  %p2763_p2 = scmp.eq.s32.totalorder %s2287_s19, 0 }
  0x7d   : > { %p354_p5 = scmp.eq.s32.totalorder %s2287_s19, 1  ;;  %p360_p7 = scmp.eq.s32.totalorder %s1635_s23, 1 }
  0x7e   : > { %p2431_p6 = por %p2763_p2, %p78_p13  ;;  %p1867_p9 = scmp.lt.s32.totalorder %s2170_s16, 2 }
  0x7f   : > { %s455_s26 = sand.u32 1, %s2166_s15   ;;  %p2438_p10 = por %p354_p5, %p72_p3 }
  0x80   : > { %p2442_p11 = por %p360_p7, %p78_p13  ;;  %s1642_s18 = sshll.u32 %s455_s26, 2 }
  0x81   : > { %s2765_s13 = scalar_select %p2438_p10, 1, 0 }
  0x82   : > { %s2766_s28 = scalar_select %p2442_p11, 1, 0 }
  0x83   : > { %s1643_s22 = sshll.u32 %s2170_s16, 6  ;;  %s459_s23 = scalar_lea.vmem [#allocation2], %s1642_s18 }
  0x84   : > { %s2450_s12 = scalar_lea.hbm %s2730_s1, %s1643_s22  ;;  %s466_s11 = sshll.u32 %s459_s23, 4  ;;  %s2452_s11 = int_to_ptr.vmem [resolvable:$true] %s466_s11 }
  0x85   : > { %p2456_p12 = pnand %p1867_p9, %p2425_p0  ;;  %s456_s5 = scalar_lea.sflag [#allocation3], %s455_s26 }
  0x86   : > { %s2066_s7 = scalar_lea.hbm %s2450_s12, 64  ;;  %s2071_s24 = scalar_lea.hbm %s2730_s1, 128 }
  0x87   : > { %p2067_p4 = scmp.ne.s32.totalorder %s2450_s12, %s2066_s7  ;;  %p2068_p1 = pneg %p2456_p12 }
  0x88   : > { %p2072_p13 = scmp.lt.u32.totalorder %s2450_s12, %s2730_s1  ;;  %p2073_p0 = scmp.lt.u32.totalorder %s2071_s24, %s2066_s7 }
  0x89   : > { %p2069_p3 = pnand %p2068_p1, %p2067_p4  ;;  %p2075_p5 = scmp.lt.u32.totalorder %s2066_s7, %s2450_s12 }
  0x8a   : > { %p2074_p2 = por %p2073_p0, %p2072_p13 }
  0x8b   : > { %p2070_p8 = pneg %p2069_p3 }
  0x8c   : > { %p2076_p7 = por %p2075_p5, %p2074_p2 }
  0x8e   : > { %p2077_p9 = pnand %p2076_p7, %p2070_p8 }
  0x90   : > { %2080 = shalt.err (!%p2077_p9)
}
  0x91   : > { %s2081_s26 = scalar_lea.vmem %s2452_s11, 64  ;;  %s2176_s23 = smov [#allocation2]  }
  0x92   : > { %p2082_p4 = scmp.ne.s32.totalorder %s2452_s11, %s2081_s26  ;;  %s2086_s18 = sshll.u32 %s2176_s23, 4  ;;  %s2087_s18 = int_to_ptr.vmem [resolvable:$false] %s2086_s18 }
  0x93   : > { %s2088_s22 = scalar_lea.vmem %s2087_s18, 128  ;;  %p2089_p10 = scmp.lt.s32.totalorder %s2452_s11, %s2087_s18 }
  0x94   : > { %p2084_p3 = pnand %p2082_p4, %p2068_p1  ;;  %p2090_p13 = scmp.lt.s32.totalorder %s2088_s22, %s2081_s26 }
  0x96   : > { %p2085_p11 = pneg %p2084_p3  ;;  %p2091_p0 = por %p2090_p13, %p2089_p10 }
  0x98   : > { %p2092_p2 = pnand %p2091_p0, %p2085_p11 }
  0x9a   : > { %2095 = shalt.err (!%p2092_p2)
}
  0x9b   : > { %1858 = dma.hbm_to_vmem [thread:$0]  (!%p2456_p12), %s2450_s12, 64, %s2452_s11, %s456_s5  }
  0x9c   : > { %p2768_p8 = scmp.ne.s32.totalorder %s2757_s20, 0 }
  0x9d   : > { %s2488_s7 = sand.u32 (!%p2768_p8), 1, %s2162_s30  }
  0x9e   : > { %475 = sbr.rel (%p2768_p8) target bundleno = 3418 (0xd5a), region = 76  ;;  %s1645_s24 = sshll.u32 (!%p2768_p8), %s2488_s7, 2 }
  0x9f   : > { %s478_s21 = scalar_lea.sflag (!%p2768_p8), [#allocation3], %s2488_s7  ;;  %s2492_s10 = scalar_lea.vmem (!%p2768_p8), [#allocation2], %s1645_s24 }
  0xa5   : > { %2141 = dma.done.wait (%p2431_p6), %s478_s21, 64  }
  0xa6   : > { %2143 = vsyncadd (%p2431_p6), %s478_s21, 4294967232  ;;  %p2769_p10 = scmp.eq.s32.totalorder %s2287_s19, 0 }
  0xa8   : > { %2145 = dma.done.wait (%p2769_p10), [#allocation6], 32   ;;  %p2770_p11 = pmov %p2769_p10 }
  0xa9   : > { %p2771_p12 = pmov %p2769_p10 }
  0xaa   : > { %2147 = vsyncadd (%p2770_p11), [#allocation6], 4294967264 }
  0xab   : > { %2149 = dma.done.wait (%p2771_p12), [#allocation9], 32   ;;  %p2772_p1 = pmov %p2769_p10 }
  0xac   : > { %p546_p5 = scmp.lt.s32.totalorder %s2287_s19, 1  ;;  %vm556_vm0 = vcmask 261120   ;;  %v1922_v7 = vld [vmem:[%s2733_s4] sm:$0xff]   ;;  %v2177_v8 = vmov 0.0   ;;  %vm2178_vm1 = vmmov 0   ;;  %v1923_v9 = vld [vmem:[%s2733_s4 + $0x8] sm:$0xff]  }
  0xad   : > { %2151 = vsyncadd (%p2772_p1), [#allocation9], 4294967264  ;;  %1722 = vmatprep.subr.bf16.mxu1 %v2177_v8  ;;  %1726 = vmatprep.mubr.msk.bf16.mxu1 %vm2178_vm1, %v2177_v8  ;;  %v1652_v19 = vld [vmem:[%s2731_s2] ss:$0 sm:$0xff]  ;;  %v1654_v26 = vld [vmem:[#allocation5] ss:$0 sm:$0xff] }
  0xae   : > { %s547_s5 = scalar_select %p546_p5, %s2287_s19, 1  ;;  %1723 = vmatpush3.bf16.msra.mxu1 %v1922_v7  ;;  %1736 = vmatprep.subr.bf16.mxu0 %v2177_v8  ;;  %v1653_v22 = vld [vmem:[%s2732_s3] ss:$0 sm:$0xff]  ;;  %vm667_vm4 = vcmask 64512   ;;  %vm729_vm5 = vcmask 1043456   ;;  %vm1447_vm8 = vcmask 523264  }
  0xaf   : > { %1724 = vmatprep.subr.bf16.mxu1 %v2177_v8  ;;  %1738 = vmatprep.mubr.msk.bf16.mxu0 %vm2178_vm1, %v2177_v8  ;;  %s2180_s12 = smov 120   ;;  %s2181_s27 = smov 88   ;;  %v552_v40 = vld [vmem:[%s2492_s10] sm:$0xf] }
  0xb0   : > { %s1651_s20 = sshll.u32 %s547_s5, 3  ;;  %v2560_v41 = vunpack.c.l.bf16 %v552_v40  ;;  %s2182_s10 = smov 64   ;;  %v776_v7 = vld [vmem:[%s2735_s6] sm:$0xf] }
  0xb1   : > { %s549_s11 = scalar_lea.vmem %s2729_s0, %s1651_s20  ;;  %s2179_s20 = smov 96  }
  0xb2   : > { %v2511_v0 = vld [vmem:[%s549_s11] sm:$0xff]  ;;  %1725 = vmatpush3.bf16.msra.mxu1 %v1923_v9  ;;  %s2183_s11 = smov 56   ;;  %s2184_s14 = smov 80   ;;  %v940_v9 = vsel %vm729_vm5, %v776_v7, 0 }
  0xb3   : > { %v557_v1 = vsel %vm556_vm0, %v2511_v0, 0.0  ;;  %1730 = vmatprep.subr.bf16.mxu1 %v2177_v8  ;;  %s2185_s26 = smov 112   ;;  %s2186_s23 = smov 104  }
  0xb4   : > { %558 = vadd.xlane.f32.xlu0 %v557_v1  ;;  %s2187_s18 = smov 48   ;;  %s2775_s24 = sld [smem:[#allocation19_spill]] }
  0xb5   : > { %s1650_s21 = sshll.u32 %s2488_s7, 3  ;;  %s2777_s22 = sld [smem:[#allocation22_spill]] }
  0xb6   : > { %p2778_p7 = scmp.ne.s32.totalorder %s2765_s13, 0  ;;  %s2190_s5 = smov [#allocation11]  }
 0x141   : > { %v559_v2 = vpop.xlane.xlu0 %558 }
 0x142   : > { %v561_v3 = vmul.f32 0.03125, %v559_v2  ;;  %v576_v18 = vsub.f32 %v2511_v0, %v559_v2 }
 0x144   : > { %v562_v4 = vsub.f32 %v2511_v0, %v561_v3  ;;  %v583_v20 = vmul.f32 %v1652_v19, %v576_v18 }
 0x146   : > { %v563_v5 = vmul.f32 %v562_v4, %v562_v4 }
 0x148   : > { %v564_v6 = vsel %vm556_vm0, %v563_v5, 0.0 }
 0x149   : > { %565 = vadd.xlane.f32.xlu0 %v564_v6 }
 0x1d6   : > { %v566_v10 = vpop.xlane.xlu0 %565 }
 0x1d7   : > { %v568_v11 = vmul.f32 0.032258064, %v566_v10  ;;  %v889_v10 = vld [vmem:[%s2735_s6 + $0x4] sm:$0xf] }
 0x1d9   : > { %1930 = vrsqrt.f32 %v568_v11  ;;  %vm571_vm2 = vcmp.eq.f32.partialorder %v568_v11, inf  ;;  %v574_v14 = vand.u32 2147483648, %v568_v11  ;;  %vm573_vm3 = vcmp.eq.f32.partialorder %v568_v11, 0.0 }
 0x1e3   : > { %v1931_v12 = vpop.eup %1930 }
 0x1e4   : > { %v570_v13 = vmul.f32 %v1931_v12, %v568_v11 }
 0x1e6   : > { %v572_v15 = vsel %vm571_vm2, %v568_v11, %v570_v13  ;;  %v894_v11 = vsel %vm729_vm5, %v889_v10, 0 }
 0x1e7   : > { %v575_v16 = vsel %vm573_vm3, %v574_v14, %v572_v15 }
 0x1e8   : > { %v584_v17 = vadd.f32 1e-06, %v575_v16 }
 0x1ea   : > { %1932 = vrcp.f32 %v584_v17 }
 0x1f4   : > { %v1933_v21 = vpop.eup %1932 }
 0x1f5   : > { %v586_v23 = vmul.f32 %v1933_v21, %v583_v20 }
 0x1f7   : > { %v593_v24 = vadd.f32 %v1653_v22, %v586_v23 }
 0x1f9   : > { %v594_v25 = vpack.c.bf16 %v593_v24, %v593_v24 }
 0x1fb   : > { %1727 = vmatmul.mubr.msk.bf16.vlgmr.msra.gmra.mrb[0].mxu1 %vm556_vm0, %v594_v25 }
 0x1fc   : > { %1732 = vmatprep.mubr.msk.bf16.mxu1 %vm2178_vm1, %v2177_v8 }
 0x2ce   : > { %v655_v27 = vpop.f32.mrb[0].mxu1 }
 0x2cf   : > { %v656_v28 = vadd.f32 %v1654_v26, %v655_v27  ;;  %v1728_v29 = vpop.f32.mrb[1].mxu1 }
 0x2d0   : > { %v658_v30 = vpop.f32.mrb[2].mxu1 }
 0x2d1   : > { %v661_v31 = vmul.f32 0.35355338, %v656_v28  ;;  %v2541_v32 = vpack.c.bf16 %v656_v28, %v656_v28  ;;  %v1729_v33 = vpop.f32.mrb[3].mxu1 }
 0x2d3   : > { %v2543_v34 = vpack.c.bf16 %v661_v31, %v661_v31  ;;  %665 = vrot.lane.b32.xlu1 %v2541_v32, %s2179_s20  ;;  %s2188_s20 = smov 72  }
 0x2d5   : > { %778 = vrot.lane.b32.xlu0 %v2543_v34, %s2180_s12  ;;  %s2189_s12 = smov 40  }
 0x2d7   : > { %780 = vrot.lane.b32.xlu1 %v2541_v32, %s2181_s27  ;;  %s2776_s27 = sld [smem:[#allocation21_spill]] }
 0x345   : > { %v666_v35 = vpop.permute.xlu1 %665 }
 0x346   : > { %v672_v36 = vsel %vm667_vm4, %v666_v35, 0 }
 0x347   : > { %1731 = vmatpush3.bf16.xpose.msra.mxu1 %v672_v36  ;;  %v779_v39 = vpop.permute.xlu0 %778 }
 0x348   : > { %1742 = vmatprep.subr.bf16.mxu1 %v2177_v8 }
 0x349   : > { %v781_v37 = vpop.permute.xlu1 %780 }
 0x34a   : > { %v786_v38 = vsel %vm667_vm4, %v781_v37, 0 }
 0x34e   : > { %1733 = vmatmul.mubr.msk.bf16.vlgmr.msra.gmra.mrb[4].mxu1 %vm667_vm4, %v2543_v34 }
 0x34f   : > { %1743 = vmatpush3.bf16.xpose.msra.mxu1 %v786_v38  ;;  %1744 = vmatprep.mubr.msk.bf16.mxu1 %vm2178_vm1, %v2177_v8 }
 0x350   : > { %1754 = vmatprep.subr.bf16.mxu1 %v2177_v8 }
 0x356   : > { %1745 = vmatmul.mubr.msk.bf16.vlgmr.msra.gmra.mrb[8].mxu1 %vm667_vm4, %v779_v39 }
 0x357   : > { %1756 = vmatprep.mubr.msk.bf16.mxu1 %vm2178_vm1, %v2177_v8  ;;  %1755 = vmatpush3.bf16.msra.mxu1 %v894_v11 }
 0x358   : > { %1766 = vmatprep.subr.bf16.mxu1 %v2177_v8 }
 0x421   : > { %v708_v42 = vpop.f32.mrb[4].mxu1 }
 0x422   : > { %v709_v43 = vadd.f32 %v708_v42, %v2560_v41  ;;  %v1734_v44 = vpop.f32.mrb[5].mxu1 }
 0x423   : > { %v711_v45 = vpop.f32.mrb[6].mxu1 }
 0x424   : > { %v1735_v46 = vpop.f32.mrb[7].mxu1  ;;  %v714_v47 = vsel %vm667_vm4, %v709_v43, -inf }
 0x425   : > { %715 = vmax.xlane.f32.xlu1 %v714_v47 }
 0x429   : > { %v822_v48 = vpop.f32.mrb[8].mxu1 }
 0x42a   : > { %v823_v49 = vadd.f32 %v822_v48, %v2560_v41  ;;  %v1746_v50 = vpop.f32.mrb[9].mxu1 }
 0x42b   : > { %v825_v51 = vpop.f32.mrb[10].mxu1 }
 0x42c   : > { %v1747_v52 = vpop.f32.mrb[11].mxu1  ;;  %v828_v53 = vsel %vm667_vm4, %v823_v49, -inf }
 0x42d   : > { %829 = vmax.xlane.f32.xlu0 %v828_v53 }
 0x436   : > { %724 = vrot.lane.b32.xlu1 %v2541_v32, %s2182_s10  ;;  %s1684_s10 = sshll.u32 %s2287_s19, 7  ;;  %s1502_s19 = scalar_lea.sflag [#allocation4], %s2488_s7 }
 0x443   : > { %838 = vrot.lane.b32.xlu0 %v2541_v32, %s2183_s11  ;;  %s545_s11 = scalar_lea.vmem [#allocation11], %s1650_s21 }
 0x447   : > { %984 = vrot.lane.b32.xlu0 %v2541_v32, %s2184_s14  ;;  %s1515_s14 = sshll.u32 %s545_s11, 4  ;;  %s2686_s14 = int_to_ptr.vmem [resolvable:$true] %s1515_s14 }
 0x448   : > { %s2096_s21 = scalar_lea.vmem %s2686_s14, 128 }
 0x449   : > { %p2097_p6 = scmp.ne.s32.totalorder %s2686_s14, %s2096_s21 }
 0x44b   : > { %982 = vrot.lane.b32.xlu0 %v2543_v34, %s2185_s26  ;;  %p2098_p9 = pnand %p2097_p6, %p2778_p7 }
 0x44d   : > { %p2099_p4 = pneg %p2098_p9 }
 0x4b2   : > { %v716_v54 = vpop.xlane.xlu1 %715 }
 0x4b3   : > { %v717_v55 = vsub.f32 %v709_v43, %v716_v54 }
 0x4b5   : > { %v718_v56 = vmul.f32 1.442695, %v717_v55 }
 0x4b6   : > { %v725_v57 = vpop.permute.xlu1 %724 }
 0x4b7   : > { %1934 = vpow2.f32 %v718_v56  ;;  %v731_v58 = vsel %vm729_vm5, %v725_v57, 0 }
 0x4b8   : > { %1737 = vmatpush3.bf16.msra.mxu0 %v731_v58 }
 0x4b9   : > { %1748 = vmatprep.subr.bf16.mxu0 %v2177_v8 }
 0x4ba   : > { %v830_v59 = vpop.xlane.xlu0 %829 }
 0x4bb   : > { %v831_v60 = vsub.f32 %v823_v49, %v830_v59  ;;  %v1093_v59 = vld [vmem:[%s2735_s6 + $0x8] sm:$0xf] }
 0x4bd   : > { %v832_v61 = vmul.f32 1.442695, %v831_v60  ;;  %v1098_v60 = vsel %vm729_vm5, %v1093_v59, 0 }
 0x4be   : > { %v839_v63 = vpop.permute.xlu0 %838 }
 0x4bf   : > { %1936 = vpow2.f32 %v832_v61  ;;  %v844_v3 = vsel %vm729_vm5, %v839_v63, 0 }
 0x4c1   : > { %v1935_v62 = vpop.eup %1934 }
 0x4c2   : > { %v720_v1 = vsel %vm667_vm4, %v1935_v62, 0.0  ;;  %v723_v2 = vpack.c.bf16 %v1935_v62, %v1935_v62  ;;  %v985_v12 = vpop.permute.xlu0 %984 }
 0x4c3   : > { %721 = vadd.xlane.f32.xlu0 %v720_v1  ;;  %v990_v33 = vsel %vm667_vm4, %v985_v12, 0 }
 0x4c4   : > { %1739 = vmatmul.mubr.msk.bf16.vlgmr.msra.gmra.mrb[0].mxu0 %vm667_vm4, %v723_v2 }
 0x4c5   : > { %1749 = vmatpush3.bf16.msra.mxu0 %v844_v3  ;;  %1750 = vmatprep.mubr.msk.bf16.mxu0 %vm2178_vm1, %v2177_v8 }
 0x4c6   : > { %1760 = vmatprep.subr.bf16.mxu0 %v2177_v8  ;;  %v983_v13 = vpop.permute.xlu0 %982 }
 0x4c9   : > { %v1937_v4 = vpop.eup %1936 }
 0x4ca   : > { %v834_v5 = vsel %vm667_vm4, %v1937_v4, 0.0  ;;  %v837_v6 = vpack.c.bf16 %v1937_v4, %v1937_v4 }
 0x4cb   : > { %835 = vadd.xlane.f32.xlu1 %v834_v5 }
 0x4cc   : > { %1751 = vmatmul.mubr.msk.bf16.vlgmr.msra.gmra.mrb[4].mxu0 %vm667_vm4, %v837_v6 }
 0x4cd   : > { %1762 = vmatprep.mubr.msk.bf16.mxu0 %vm2178_vm1, %v2177_v8  ;;  %1761 = vmatpush3.bf16.msra.mxu0 %v940_v9 }
 0x4ce   : > { %1772 = vmatprep.subr.bf16.mxu0 %v2177_v8 }
 0x4d9   : > { %1141 = vrot.lane.b32.xlu0 %v2543_v34, %s2186_s23 }
 0x4dc   : > { %1042 = vrot.lane.b32.xlu1 %v2541_v32, %s2187_s18  ;;  %s2773_s18 = sld [smem:[#allocation18_spill]] }
 0x550   : > { %v722_v14 = vpop.xlane.xlu0 %721 }
 0x551   : > { %1938 = vrcp.f32 %v722_v14 }
 0x554   : > { %v1142_v58 = vpop.permute.xlu0 %1141 }
 0x558   : > { %v836_v15 = vpop.xlane.xlu1 %835 }
 0x559   : > { %1940 = vrcp.f32 %v836_v15 }
 0x55b   : > { %v1939_v16 = vpop.eup %1938 }
 0x55c   : > { %v1043_v20 = vpop.permute.xlu1 %1042 }
 0x55d   : > { %v1048_v24 = vsel %vm729_vm5, %v1043_v20, 0 }
 0x563   : > { %v1941_v25 = vpop.eup %1940 }
 0x597   : > { %v767_v17 = vpop.f32.mrb[0].mxu0 }
 0x598   : > { %v774_v18 = vmul.f32 %v1939_v16, %v767_v17  ;;  %v1740_v19 = vpop.f32.mrb[1].mxu0 }
 0x599   : > { %v770_v21 = vpop.f32.mrb[2].mxu0 }
 0x59a   : > { %v775_v22 = vpack.c.bf16 %v774_v18, %v774_v18  ;;  %v1741_v23 = vpop.f32.mrb[3].mxu0 }
 0x59c   : > { %1763 = vmatmul.mubr.msk.bf16.vlgmr.msra.gmra.mrb[8].mxu0 %vm667_vm4, %v775_v22 }
 0x59d   : > { %1773 = vmatpush3.bf16.msra.mxu0 %v1048_v24  ;;  %1774 = vmatprep.mubr.msk.bf16.mxu0 %vm2178_vm1, %v2177_v8 }
 0x59e   : > { %1784 = vmatprep.subr.bf16.mxu0 %v2177_v8 }
 0x59f   : > { %v880_v26 = vpop.f32.mrb[4].mxu0 }
 0x5a0   : > { %v887_v27 = vmul.f32 %v1941_v25, %v880_v26  ;;  %v1752_v28 = vpop.f32.mrb[5].mxu0 }
 0x5a1   : > { %v883_v29 = vpop.f32.mrb[6].mxu0 }
 0x5a2   : > { %v888_v30 = vpack.c.bf16 %v887_v27, %v887_v27  ;;  %v1753_v31 = vpop.f32.mrb[7].mxu0 }
 0x5a4   : > { %1757 = vmatmul.mubr.msk.bf16.vlgmr.msra.gmra.mrb[12].mxu1 %vm667_vm4, %v888_v30 }
 0x5a5   : > { %1767 = vmatpush3.bf16.xpose.msra.mxu1 %v990_v33  ;;  %1768 = vmatprep.mubr.msk.bf16.mxu1 %vm2178_vm1, %v2177_v8 }
 0x5a6   : > { %1778 = vmatprep.subr.bf16.mxu1 %v2177_v8 }
 0x5ac   : > { %1769 = vmatmul.mubr.msk.bf16.vlgmr.msra.gmra.mrb[16].mxu1 %vm667_vm4, %v983_v13 }
 0x5ad   : > { %1780 = vmatprep.mubr.msk.bf16.mxu1 %vm2178_vm1, %v2177_v8  ;;  %1779 = vmatpush3.bf16.msra.mxu1 %v1098_v60 }
 0x5ae   : > { %1790 = vmatprep.subr.bf16.mxu1 %v2177_v8 }
 0x66f   : > { %v976_v34 = vpop.f32.mrb[8].mxu0 }
 0x670   : > { %v1764_v35 = vpop.f32.mrb[9].mxu0 }
 0x671   : > { %v979_v36 = vpop.f32.mrb[10].mxu0 }
 0x672   : > { %v1765_v37 = vpop.f32.mrb[11].mxu0 }
 0x677   : > { %v930_v38 = vpop.f32.mrb[12].mxu1 }
 0x678   : > { %v2607_v39 = vadd.f32 %v976_v34, %v930_v38  ;;  %v1758_v40 = vpop.f32.mrb[13].mxu1  ;;  %v1670_v38 = vld [vmem:[#allocation7] ss:$0 sm:$0xff] }
 0x679   : > { %v933_v42 = vpop.f32.mrb[14].mxu1 }
 0x67a   : > { %v1759_v43 = vpop.f32.mrb[15].mxu1 }
 0x67f   : > { %v1026_v44 = vpop.f32.mrb[16].mxu1 }
 0x680   : > { %v1027_v45 = vadd.f32 %v1026_v44, %v2560_v41  ;;  %v1770_v46 = vpop.f32.mrb[17].mxu1 }
 0x681   : > { %v1029_v47 = vpop.f32.mrb[18].mxu1 }
 0x682   : > { %v1771_v48 = vpop.f32.mrb[19].mxu1  ;;  %v1032_v49 = vsel %vm667_vm4, %v1027_v45, -inf }
 0x683   : > { %1033 = vmax.xlane.f32.xlu1 %v1032_v49 }
 0x694   : > { %1143 = vrot.lane.b32.xlu1 %v2541_v32, %s2188_s20  ;;  %s2774_s20 = sld [smem:[#allocation20_spill]] }
 0x710   : > { %v1034_v50 = vpop.xlane.xlu1 %1033 }
 0x711   : > { %v1035_v51 = vsub.f32 %v1027_v45, %v1034_v50  ;;  %v1924_v50 = vld [vmem:[%s2773_s18] sm:$0xff]  }
 0x713   : > { %v1036_v52 = vmul.f32 1.442695, %v1035_v51  ;;  %v1926_v51 = vld [vmem:[%s2774_s20] sm:$0xff]  }
 0x714   : > { %v1144_v54 = vpop.permute.xlu1 %1143 }
 0x715   : > { %1942 = vpow2.f32 %v1036_v52  ;;  %v1149_v57 = vsel %vm667_vm4, %v1144_v54, 0  ;;  %v1927_v52 = vld [vmem:[%s2774_s20 + $0x8] sm:$0xff]  }
 0x71f   : > { %v1943_v53 = vpop.eup %1942 }
 0x720   : > { %v1038_v55 = vsel %vm667_vm4, %v1943_v53, 0.0  ;;  %v1041_v56 = vpack.c.bf16 %v1943_v53, %v1943_v53 }
 0x721   : > { %1039 = vadd.xlane.f32.xlu1 %v1038_v55 }
 0x722   : > { %1775 = vmatmul.mubr.msk.bf16.vlgmr.msra.gmra.mrb[12].mxu0 %vm667_vm4, %v1041_v56 }
 0x723   : > { %1785 = vmatpush3.bf16.xpose.msra.mxu0 %v1149_v57  ;;  %1786 = vmatprep.mubr.msk.bf16.mxu0 %vm2178_vm1, %v2177_v8 }
 0x724   : > { %1796 = vmatprep.subr.bf16.mxu0 %v2177_v8 }
 0x72a   : > { %1787 = vmatmul.mubr.msk.bf16.vlgmr.msra.gmra.mrb[16].mxu0 %vm667_vm4, %v1142_v58 }
 0x72b   : > { %1798 = vmatprep.mubr.msk.bf16.mxu0 %vm2178_vm1, %v2177_v8 }
 0x732   : > { %1201 = vrot.lane.b32.xlu1 %v2541_v32, %s2189_s12  ;;  %s2100_s12 = sshll.u32 %s2190_s5, 4  ;;  %s2101_s12 = int_to_ptr.vmem [resolvable:$false] %s2100_s12 }
 0x733   : > { %p2103_p3 = scmp.lt.s32.totalorder %s2686_s14, %s2101_s12 }
 0x7ae   : > { %v1040_v61 = vpop.xlane.xlu1 %1039 }
 0x7af   : > { %1944 = vrcp.f32 %v1040_v61 }
 0x7b2   : > { %v1202_v3 = vpop.permute.xlu1 %1201 }
 0x7b3   : > { %v1207_v32 = vsel %vm729_vm5, %v1202_v3, 0 }
 0x7b9   : > { %v1945_v62 = vpop.eup %1944 }
 0x7f5   : > { %v1084_v63 = vpop.f32.mrb[12].mxu0 }
 0x7f6   : > { %v1091_v1 = vmul.f32 %v1945_v62, %v1084_v63  ;;  %v1776_v2 = vpop.f32.mrb[13].mxu0  ;;  %v1671_v62 = vld [vmem:[#allocation8] ss:$0 sm:$0xff] }
 0x7f7   : > { %v1087_v4 = vpop.f32.mrb[14].mxu0  ;;  %v1672_v2 = vld [vmem:[#allocation10] ss:$0 sm:$0xff] }
 0x7f8   : > { %v1092_v5 = vpack.c.bf16 %v1091_v1, %v1091_v1  ;;  %v1777_v6 = vpop.f32.mrb[15].mxu0 }
 0x7f9   : > { %v1928_v6 = vld [vmem:[%s2774_s20 + $0x10] sm:$0xff]  }
 0x7fa   : > { %1781 = vmatmul.mubr.msk.bf16.vlgmr.msra.gmra.mrb[20].mxu1 %vm667_vm4, %v1092_v5 }
 0x7fb   : > { %1791 = vmatpush3.bf16.msra.mxu1 %v1207_v32  ;;  %1792 = vmatprep.mubr.msk.bf16.mxu1 %vm2178_vm1, %v2177_v8  ;;  %v1929_v32 = vld [vmem:[%s2774_s20 + $0x18] sm:$0xff]  }
 0x7fc   : > { %1802 = vmatprep.subr.bf16.mxu1 %v2177_v8 }
 0x7fd   : > { %v1185_v7 = vpop.f32.mrb[16].mxu0 }
 0x7fe   : > { %v1186_v9 = vadd.f32 %v1185_v7, %v2560_v41  ;;  %v1788_v10 = vpop.f32.mrb[17].mxu0  ;;  %v1252_v41 = vld [vmem:[%s2735_s6 + $0xc] sm:$0xf]  ;;  %v1673_v7 = vld [vmem:[%s2775_s24] ss:$0 sm:$0xff]  ;;  %s2684_s24 = scalar_lea.hbm %s2777_s22, %s1684_s10 }
 0x7ff   : > { %v1188_v11 = vpop.f32.mrb[18].mxu0  ;;  %v1257_v20 = vsel %vm729_vm5, %v1252_v41, 0 }
 0x800   : > { %v1789_v12 = vpop.f32.mrb[19].mxu0  ;;  %v1191_v13 = vsel %vm667_vm4, %v1186_v9, -inf  ;;  %1797 = vmatpush3.bf16.msra.mxu0 %v1257_v20 }
 0x801   : > { %1192 = vmax.xlane.f32.xlu0 %v1191_v13  ;;  %1810 = vmatprep.subr.bf16.mxu0 %v2177_v8 }
 0x88e   : > { %v1193_v14 = vpop.xlane.xlu0 %1192 }
 0x88f   : > { %v1194_v15 = vsub.f32 %v1186_v9, %v1193_v14 }
 0x891   : > { %v1195_v16 = vmul.f32 1.442695, %v1194_v15 }
 0x893   : > { %1946 = vpow2.f32 %v1195_v16  ;;  %v1682_v16 = vld [vmem:[%s2776_s27] ss:$0 sm:$0xff]  ;;  %s2102_s27 = scalar_lea.vmem %s2101_s12, 256 }
 0x894   : > { %p2104_p13 = scmp.lt.s32.totalorder %s2102_s27, %s2096_s21 }
 0x896   : > { %p2105_p0 = por %p2104_p13, %p2103_p3 }
 0x898   : > { %p2106_p2 = pnand %p2105_p0, %p2099_p4 }
 0x89d   : > { %v1947_v17 = vpop.eup %1946 }
 0x89e   : > { %v1197_v18 = vsel %vm667_vm4, %v1947_v17, 0.0  ;;  %v1200_v19 = vpack.c.bf16 %v1947_v17, %v1947_v17 }
 0x89f   : > { %1198 = vadd.xlane.f32.xlu0 %v1197_v18 }
 0x8a0   : > { %1793 = vmatmul.mubr.msk.bf16.vlgmr.msra.gmra.mrb[24].mxu1 %vm667_vm4, %v1200_v19 }
 0x8a1   : > { %1806 = vmatprep.mubr.msk.bf16.mxu1 %vm2178_vm1, %v2177_v8  ;;  %1803 = vmatpush3.bf16.msra.mxu1 %v1924_v50 }
 0x8a2   : > { %1804 = vmatprep.subr.bf16.mxu1 %v2177_v8 }
 0x8cd   : > { %v1134_v21 = vpop.f32.mrb[20].mxu1 }
 0x8ce   : > { %v1140_v22 = vadd.f32 %v1134_v21, %v2607_v39  ;;  %v1782_v23 = vpop.f32.mrb[21].mxu1 }
 0x8cf   : > { %v1137_v24 = vpop.f32.mrb[22].mxu1 }
 0x8d0   : > { %v1783_v25 = vpop.f32.mrb[23].mxu1 }
 0x92c   : > { %v1199_v26 = vpop.xlane.xlu0 %1198 }
 0x92d   : > { %1948 = vrcp.f32 %v1199_v26 }
 0x937   : > { %v1949_v27 = vpop.eup %1948 }
 0x973   : > { %v1243_v28 = vpop.f32.mrb[24].mxu1 }
 0x974   : > { %v1250_v29 = vmul.f32 %v1949_v27, %v1243_v28  ;;  %v1794_v30 = vpop.f32.mrb[25].mxu1 }
 0x975   : > { %v1246_v31 = vpop.f32.mrb[26].mxu1 }
 0x976   : > { %v1251_v33 = vpack.c.bf16 %v1250_v29, %v1250_v29  ;;  %v1795_v34 = vpop.f32.mrb[27].mxu1 }
 0x978   : > { %1799 = vmatmul.mubr.msk.bf16.vlgmr.msra.gmra.mrb[20].mxu0 %vm667_vm4, %v1251_v33 }
 0x979   : > { %1818 = vmatprep.mubr.msk.bf16.mxu0 %vm2178_vm1, %v2177_v8  ;;  %1811 = vmatpush3.bf16.msra.mxu0 %v1926_v51 }
 0x97a   : > { %1812 = vmatprep.subr.bf16.mxu0 %v2177_v8 }
 0x97d   : > { %1813 = vmatpush3.bf16.msra.mxu0 %v1927_v52 }
 0x97e   : > { %1814 = vmatprep.subr.bf16.mxu0 %v2177_v8 }
 0x981   : > { %1815 = vmatpush3.bf16.msra.mxu0 %v1928_v6 }
 0x982   : > { %1816 = vmatprep.subr.bf16.mxu0 %v2177_v8 }
 0x985   : > { %1817 = vmatpush3.bf16.msra.mxu0 %v1929_v32 }
 0xa4b   : > { %v1293_v35 = vpop.f32.mrb[20].mxu0 }
 0xa4c   : > { %v1299_v36 = vadd.f32 %v1293_v35, %v1140_v22  ;;  %v1800_v37 = vpop.f32.mrb[21].mxu0 }
 0xa4d   : > { %v1296_v39 = vpop.f32.mrb[22].mxu0 }
 0xa4e   : > { %v1300_v40 = vadd.f32 %v1299_v36, %v2511_v0  ;;  %v1801_v42 = vpop.f32.mrb[23].mxu0  ;;  %v1925_v0 = vld [vmem:[%s2773_s18 + $0x8] sm:$0xff]  }
 0xa4f   : > { %1805 = vmatpush3.bf16.msra.mxu1 %v1925_v0 }
 0xa50   : > { %v1308_v43 = vadd.f32 %v1670_v38, %v1300_v40 }
 0xa52   : > { %v1311_v44 = vsel %vm556_vm0, %v1308_v43, 0.0 }
 0xa53   : > { %1312 = vadd.xlane.f32.xlu1 %v1311_v44 }
 0xae0   : > { %v1313_v45 = vpop.xlane.xlu1 %1312 }
 0xae1   : > { %v1314_v46 = vmul.f32 0.03125, %v1313_v45  ;;  %v1328_v61 = vsub.f32 %v1308_v43, %v1313_v45 }
 0xae3   : > { %v1315_v47 = vsub.f32 %v1308_v43, %v1314_v46  ;;  %v1335_v63 = vmul.f32 %v1671_v62, %v1328_v61 }
 0xae5   : > { %v1316_v48 = vmul.f32 %v1315_v47, %v1315_v47 }
 0xae7   : > { %v1317_v49 = vsel %vm556_vm0, %v1316_v48, 0.0 }
 0xae8   : > { %1318 = vadd.xlane.f32.xlu0 %v1317_v49 }
 0xb75   : > { %v1319_v53 = vpop.xlane.xlu0 %1318 }
 0xb76   : > { %v1320_v54 = vmul.f32 0.032258064, %v1319_v53 }
 0xb78   : > { %1950 = vrsqrt.f32 %v1320_v54  ;;  %vm1323_vm6 = vcmp.eq.f32.partialorder %v1320_v54, inf  ;;  %v1326_v57 = vand.u32 2147483648, %v1320_v54  ;;  %vm1325_vm7 = vcmp.eq.f32.partialorder %v1320_v54, 0.0 }
 0xb82   : > { %v1951_v55 = vpop.eup %1950 }
 0xb83   : > { %v1322_v56 = vmul.f32 %v1951_v55, %v1320_v54 }
 0xb85   : > { %v1324_v58 = vsel %vm1323_vm6, %v1320_v54, %v1322_v56 }
 0xb86   : > { %v1327_v59 = vsel %vm1325_vm7, %v1326_v57, %v1324_v58 }
 0xb87   : > { %v1336_v60 = vadd.f32 1e-06, %v1327_v59 }
 0xb89   : > { %1952 = vrcp.f32 %v1336_v60 }
 0xb93   : > { %v1953_v1 = vpop.eup %1952 }
 0xb94   : > { %v1338_v3 = vmul.f32 %v1953_v1, %v1335_v63 }
 0xb96   : > { %v1345_v4 = vadd.f32 %v1672_v2, %v1338_v3 }
 0xb98   : > { %v1346_v5 = vpack.c.bf16 %v1345_v4, %v1345_v4 }
 0xb9a   : > { %1807 = vmatmul.mubr.msk.bf16.vlgmr.msra.gmra.mrb[28].mxu1 %vm556_vm0, %v1346_v5 }
 0xc6d   : > { %v1407_v9 = vpop.f32.mrb[28].mxu1 }
 0xc6e   : > { %v1408_v10 = vadd.f32 %v1673_v7, %v1407_v9  ;;  %v1808_v11 = vpop.f32.mrb[29].mxu1 }
 0xc6f   : > { %v1410_v12 = vpop.f32.mrb[30].mxu1 }
 0xc70   : > { %v1413_v13 = vmax.f32 %v1408_v10, 0.0  ;;  %v1809_v14 = vpop.f32.mrb[31].mxu1 }
 0xc72   : > { %v1414_v15 = vpack.c.bf16 %v1413_v13, %v1413_v13 }
 0xc74   : > { %1819 = vmatmul.mubr.msk.bf16.vlgmr.msra.gmra.mrb[24].mxu0 %vm1447_vm8, %v1414_v15 }
 0xd47   : > { %v1485_v8 = vpop.f32.mrb[24].mxu0 }
 0xd48   : > { %v1491_v17 = vadd.f32 %v1485_v8, %v1308_v43  ;;  %v1820_v18 = vpop.f32.mrb[25].mxu0 }
 0xd49   : > { %v1488_v19 = vpop.f32.mrb[26].mxu0 }
 0xd4a   : > { %v1499_v41 = vadd.f32 %v1682_v16, %v1491_v17  ;;  %v1821_v20 = vpop.f32.mrb[27].mxu0 }
 0xd4c   : > { %1500 = vst.msk [vmem:[%s545_s11] sm:$0xff] %vm556_vm0, %v1499_v41 }
 0xd4d   : > { %2109 = shalt.err (!%p2106_p2)
}
 0xd4e   : > { %s2110_s7 = scalar_lea.hbm %s2684_s24, 128  ;;  %s2114_s26 = scalar_lea.hbm %s2777_s22, 256 }
 0xd4f   : > { %p2111_p8 = scmp.ne.s32.totalorder %s2684_s24, %s2110_s7  ;;  %p2115_p12 = scmp.lt.u32.totalorder %s2684_s24, %s2777_s22 }
 0xd50   : > { %p2116_p1 = scmp.lt.u32.totalorder %s2114_s26, %s2110_s7  ;;  %p2118_p6 = scmp.lt.u32.totalorder %s2110_s7, %s2684_s24 }
 0xd51   : > { %p2112_p10 = pnand %p2111_p8, %p2778_p7 }
 0xd52   : > { %p2117_p5 = por %p2116_p1, %p2115_p12 }
 0xd53   : > { %p2113_p11 = pneg %p2112_p10 }
 0xd54   : > { %p2119_p9 = por %p2118_p6, %p2117_p5 }
 0xd56   : > { %p2120_p4 = pnand %p2119_p9, %p2113_p11 }
 0xd58   : > { %2123 = shalt.err (!%p2120_p4)
}
 0xd59   : > { %1840 = dma.vmem_to_hbm [thread:$0]  (%p2778_p7), %s2686_s14, 128, %s2684_s24, %s1502_s19  }
 0xd5a PF: > { %s1527_s21 = sand.u32 1, %s2158_s29   ;;  %p2779_p3 = scmp.ne.s32.totalorder %s2766_s28, 0 }
 0xd5b   : > { %p2780_p13 = scmp.ge.s32.totalorder %s2170_s16, 2  ;;  %s1528_s12 = scalar_lea.sflag [#allocation4], %s1527_s21 }
 0xd5d   : > { %p1860_p0 = pnand %p2780_p13, %p2779_p3 }
 0xd5f   : > { %2153 = dma.done.wait (!%p1860_p0), %s1528_s12, 128  }
 0xd60   : > { %2155 = vsyncadd (!%p1860_p0), %s1528_s12, 4294967168  ;;  %p29_p2 = scmp.ge.s32.totalorder %s2412_s25, 4   ;;  %s2781_s29 = smov %s2162_s30 }
 0xd61   : > { %s2782_s30 = smov %s2166_s15  ;;  %s2783_s15 = smov %s2423_s17 }
 0xd62   : > { %s2784_s16 = smov %s2412_s25  ;;  %31 = sbr.rel (!%p29_p2) target bundleno = 15 (0xf), region = 140 }
 0xd69   :  { %1533 = vsyncpa [#allocation3], 1 }
 0xd6a   :  { %1535 = vsyncpa [#allocation3 + $0x1], 1 }
 0xd6b   :  { %1536 = vsyncpa [#allocation6], 1 }
 0xd6c   :  { %1537 = vsyncpa [#allocation9], 1 }
 0xd6d   :  { %1538 = vsyncpa [#allocation4], 1 }
 0xd6e   :  { %1540 = vsyncpa [#allocation4 + $0x1], 1 }

</bundles_post_ra>
